<compile_context>
chip_gen: v6e
topology: v6e:2x2x1
jax: 0.10.0
libtpu: 0.0.40
codegen_flags: <defaults>
</compile_context>

<pallas_src>
import jax
import jax.numpy as jnp
from jax.experimental import pallas as pl
from jax.experimental.pallas import tpu as pltpu

GATE_PITCH = 128  # each fused gate block starts on a 128-lane boundary


# ----------------------------------------------------------------------------
# Fused kernel: dual-LSTM recurrence + dense head + sigmoid.
# Fused gate tile is (Bp, 4*GATE_PITCH); gate g occupies lanes
# [g*128, g*128 + 2H) laid out branch-minor: [gate_r(H) | gate_h(H) | zeros],
# matching the [h_r | h_h] / [c_r | c_h] state layout.
# ----------------------------------------------------------------------------
def dcode_fused_kernel(x2_ref, emb_ref,
                       wih2_ref, bg_ref, whh_ref,
                       wrh_ref, brh_ref,
                       w1_ref, b1_ref, w2_ref, b2_ref, w3_ref, b3_ref,
                       wcat_rh_ref, wcat_f_ref, bcat_ref,
                       wtop_ref, btop_ref,
                       out_ref, xw_scr):
    Bp = out_ref.shape[0]
    T = x2_ref.shape[0] // Bp
    H2 = whh_ref.shape[0]          # 2 * hidden (both branches stacked)
    GP = GATE_PITCH

    f32, bf16 = jnp.float32, jnp.bfloat16
    relu = lambda v: jnp.maximum(v, 0.0)

    def bdot(a, w):
        # bf16 MXU operands (weights pre-cast offline), f32 accumulation.
        return jnp.dot(a.astype(bf16), w, preferred_element_type=f32)

    # ---- hoisted input projection (off critical path; kept f32) ----------
    # (T*Bp, 2) @ (2, 4*GP) + (1, 4*GP); row index = t*Bp + b.
    xw_scr[...] = (jnp.dot(x2_ref[...], wih2_ref[...],
                           preferred_element_type=f32) + bg_ref[...])

    # ---- fused two-branch LSTM recurrence --------------------------------
    whh = whh_ref[...]             # (2H, 4*GP) block-diagonal, bf16

    h_cat = jnp.zeros((Bp, H2), f32)
    c_cat = jnp.zeros((Bp, H2), f32)

    # T is small & static -> unrolled recurrence (serial critical path).
    for t in range(T):
        # Sublane-aligned static slice (Bp is a multiple of 8).
        gates = xw_scr[t * Bp:(t + 1) * Bp, :] + bdot(h_cat, whh)   # (Bp, 4*GP)
        sg = jax.nn.sigmoid(gates)           # single full-width EUP pass
        i_g = sg[:, 0 * GP:0 * GP + H2]      # lane-0-aligned views
        f_g = sg[:, 1 * GP:1 * GP + H2]
        g_g = 2.0 * sg[:, 2 * GP:2 * GP + H2] - 1.0   # tanh via scaled sigmoid
        o_g = sg[:, 3 * GP:3 * GP + H2]
        c_cat = f_g * c_cat + i_g * g_g
        h_cat = o_g * jnp.tanh(c_cat)

    # ---- dense head (dropout = identity in eval mode) ---------------------
    # fc_r1 / fc_h1 fused as one block-diagonal matmul -> (Bp, 32) = [rv | hv]
    rvhv = relu(bdot(h_cat, wrh_ref[...]) + brh_ref[...])

    f1 = relu(bdot(emb_ref[...], w1_ref[...]) + b1_ref[...])     # (Bp, 128)
    f2 = relu(bdot(f1, w2_ref[...]) + b2_ref[...])               # (Bp, 64)
    f3 = relu(bdot(f2, w3_ref[...]) + b3_ref[...])               # (Bp, 64)

    # fc_cat split offline into two operands -> no scratch / masked stores.
    cat = relu(bdot(rvhv, wcat_rh_ref[...])
               + bdot(f3, wcat_f_ref[...]) + bcat_ref[...])      # (Bp, 64)

    # Lane-dense writeback: wtop zero-padded to (64,128); wrapper keeps col 0.
    out_ref[...] = jax.nn.sigmoid(bdot(cat, wtop_ref[...]) + btop_ref[...])


# ----------------------------------------------------------------------------
# Offline fused-weight construction (call ONCE, outside the jitted path).
# ----------------------------------------------------------------------------
def _prep_branch(w_ih, w_hh, b_ih, b_hh, H):
    # Transpose to (in, 4H); PyTorch gate order i, f, g, o along the 4H axis.
    wih_t = w_ih.T                     # (1, 4H)
    whh_t = w_hh.T                     # (H, 4H)
    b = (b_ih + b_hh)[None, :]         # (1, 4H)
    # tanh(x) = 2*sigmoid(2x) - 1 -> fold the 2x into the g-gate columns only.
    scale = jnp.concatenate([jnp.ones((2 * H,), jnp.float32),
                             2.0 * jnp.ones((H,), jnp.float32),
                             jnp.ones((H,), jnp.float32)])[None, :]
    return wih_t * scale, whh_t * scale, b * scale


def _place_gates(dst, src, row_off, branch, H):
    # src: (rows, 4H) in [i,f,g,o] order; gate g lands at lane g*GATE_PITCH,
    # branch 0 (r) -> +0, branch 1 (h) -> +H within the gate block.
    rows = src.shape[0]
    for g in range(4):
        col = g * GATE_PITCH + branch * H
        dst = dst.at[row_off:row_off + rows, col:col + H].set(
            src[:, g * H:(g + 1) * H])
    return dst


def build_fused_params(p):
    H = p["lstm_r_w_hh"].shape[1]
    G8 = 4 * GATE_PITCH
    f32, bf16 = jnp.float32, jnp.bfloat16

    wih_r, whh_r, b_r = _prep_branch(p["lstm_r_w_ih"], p["lstm_r_w_hh"],
                                     p["lstm_r_b_ih"], p["lstm_r_b_hh"], H)
    wih_h, whh_h, b_h = _prep_branch(p["lstm_h_w_ih"], p["lstm_h_w_hh"],
                                     p["lstm_h_b_ih"], p["lstm_h_b_hh"], H)

    # Input projection (2, 4*GP): row 0 feeds r-columns, row 1 feeds h-columns.
    wih2 = _place_gates(jnp.zeros((2, G8), f32), wih_r, 0, 0, H)
    wih2 = _place_gates(wih2, wih_h, 1, 1, H)

    bg = _place_gates(jnp.zeros((1, G8), f32), b_r, 0, 0, H)
    bg = _place_gates(bg, b_h, 0, 1, H)

    # Block-diagonal recurrent weight (2H, 4*GP): rows 0:H = h_r, H:2H = h_h.
    whh_bd = _place_gates(jnp.zeros((2 * H, G8), f32), whh_r, 0, 0, H)
    whh_bd = _place_gates(whh_bd, whh_h, H, 1, H)

    # fc_r1 / fc_h1 fused block-diagonal (2H, 32): cols 0:16 = rv, 16:32 = hv.
    wrh = jnp.zeros((2 * H, 32), f32)
    wrh = wrh.at[:H, :16].set(p["fc_r1_w"].T)
    wrh = wrh.at[H:, 16:].set(p["fc_h1_w"].T)
    brh = jnp.concatenate([p["fc_r1_b"], p["fc_h1_b"]])[None, :]   # (1, 32)

    # fc_cat split: first 32 input features are [rv|hv], last 64 are f3.
    wcat_rh = p["fc_cat_w"][:, :32].T      # (32, 64)
    wcat_f = p["fc_cat_w"][:, 32:].T       # (64, 64)

    # top zero-padded to a lane-dense (64, 128) operand; wrapper keeps col 0.
    wtop = jnp.zeros((64, 128), f32).at[:, :1].set(p["top_w"].T)
    btop = jnp.zeros((1, 128), f32).at[:, :1].set(p["top_b"][None, :])

    return {
        "wih2": wih2, "bg": bg, "whh": whh_bd.astype(bf16),
        "wrh": wrh.astype(bf16), "brh": brh,
        "w1": p["fc_b1_w"].T.astype(bf16), "b1": p["fc_b1_b"][None, :],
        "w2": p["fc_b2_w"].T.astype(bf16), "b2": p["fc_b2_b"][None, :],
        "w3": p["fc_b3_w"].T.astype(bf16), "b3": p["fc_b3_b"][None, :],
        "wcat_rh": wcat_rh.astype(bf16), "wcat_f": wcat_f.astype(bf16),
        "bcat": p["fc_cat_b"][None, :],
        "wtop": wtop.astype(bf16), "btop": btop,
        # Embedding tables (gather glue stays in plain JAX).
        "emb_station": p["emb_station"], "emb_dcode": p["emb_dcode"],
        "emb_timeslot": p["emb_timeslot"], "emb_dow": p["emb_dow"],
        "emb_we": p["emb_we"],
    }


# ----------------------------------------------------------------------------
# Full forward pass (mirrors DcodeHybrid.forward, eval mode).
# `fp` is the precomputed fused-parameter dict from build_fused_params().
# ----------------------------------------------------------------------------
@jax.jit
def dcode_hybrid_forward(fp, r, h, t, s):
    B, T, _ = r.shape
    Bp = ((B + 7) // 8) * 8            # sublane-aligned padded batch

    # Embedding lookups + concat (data-dependent gathers stay in plain JAX).
    emb = jnp.concatenate([
        fp["emb_station"][s[:, 0]],
        fp["emb_dcode"][s[:, 1]],
        fp["emb_timeslot"][t[:, 0]],
        fp["emb_dow"][t[:, 1]],
        fp["emb_we"][t[:, 2]],
    ], axis=1)
    emb = jnp.pad(emb, ((0, Bp - B), (0, 0)))

    # Time-major, batch-padded sequence: row = t*Bp + b; col0 = r, col1 = h.
    # TODO(synk): at production batch, feed r/h already time-major and grid
    # the kernel over batch tiles instead of this per-call transpose.
    x2 = jnp.stack([r[:, :, 0].T, h[:, :, 0].T], axis=-1)        # (T, B, 2)
    x2 = jnp.pad(x2, ((0, 0), (0, Bp - B), (0, 0))).reshape(T * Bp, 2)

    args = (x2, emb,
            fp["wih2"], fp["bg"], fp["whh"],
            fp["wrh"], fp["brh"],
            fp["w1"], fp["b1"], fp["w2"], fp["b2"], fp["w3"], fp["b3"],
            fp["wcat_rh"], fp["wcat_f"], fp["bcat"],
            fp["wtop"], fp["btop"])

    vmem = pl.BlockSpec(memory_space=pltpu.MemorySpace.VMEM)
    out = pl.pallas_call(
        dcode_fused_kernel,
        out_shape=jax.ShapeDtypeStruct((Bp, 128), jnp.float32),
        in_specs=[vmem] * len(args),
        out_specs=vmem,
        scratch_shapes=[pltpu.VMEM((T * Bp, 4 * GATE_PITCH), jnp.float32)],
    )(*args)
    return out[:B, :1]


# ----------------------------------------------------------------------------
# Pure-JAX reference (numerics check of the fused kernel).
# ----------------------------------------------------------------------------
def reference_forward(p, r, h, t, s):
    hp = jax.lax.Precision.HIGHEST
    relu = jax.nn.relu

    def lstm_last(x, w_ih, w_hh, b_ih, b_hh):
        B, T, _ = x.shape
        H = w_hh.shape[1]
        hh = jnp.zeros((B, H), jnp.float32)
        cc = jnp.zeros((B, H), jnp.float32)
        for step in range(T):
            g = (jnp.dot(x[:, step, :], w_ih.T, precision=hp)
                 + jnp.dot(hh, w_hh.T, precision=hp) + b_ih + b_hh)
            i = jax.nn.sigmoid(g[:, :H])
            f = jax.nn.sigmoid(g[:, H:2 * H])
            gg = jnp.tanh(g[:, 2 * H:3 * H])
            o = jax.nn.sigmoid(g[:, 3 * H:])
            cc = f * cc + i * gg
            hh = o * jnp.tanh(cc)
        return hh

    rl = lstm_last(r, p["lstm_r_w_ih"], p["lstm_r_w_hh"],
                   p["lstm_r_b_ih"], p["lstm_r_b_hh"])
    hl = lstm_last(h, p["lstm_h_w_ih"], p["lstm_h_w_hh"],
                   p["lstm_h_b_ih"], p["lstm_h_b_hh"])
    rv = relu(jnp.dot(rl, p["fc_r1_w"].T, precision=hp) + p["fc_r1_b"])
    hv = relu(jnp.dot(hl, p["fc_h1_w"].T, precision=hp) + p["fc_h1_b"])
    emb = jnp.concatenate([
        p["emb_station"][s[:, 0]], p["emb_dcode"][s[:, 1]],
        p["emb_timeslot"][t[:, 0]], p["emb_dow"][t[:, 1]],
        p["emb_we"][t[:, 2]]], axis=1)
    f1 = relu(jnp.dot(emb, p["fc_b1_w"].T, precision=hp) + p["fc_b1_b"])
    f2 = relu(jnp.dot(f1, p["fc_b2_w"].T, precision=hp) + p["fc_b2_b"])
    f3 = relu(jnp.dot(f2, p["fc_b3_w"].T, precision=hp) + p["fc_b3_b"])
    cat = relu(jnp.dot(jnp.concatenate([rv, hv, f3], axis=1),
                       p["fc_cat_w"].T, precision=hp) + p["fc_cat_b"])
    return jax.nn.sigmoid(jnp.dot(cat, p["top_w"].T, precision=hp) + p["top_b"])


# ----------------------------------------------------------------------------
# Deterministic parameter init (shapes follow the PyTorch __init__).
# ----------------------------------------------------------------------------
def init_params(key, hidden_size, station_embedding_dim, embedding_dim):
    H = hidden_size
    Sd = station_embedding_dim
    Ed = embedding_dim
    E_in = Sd + 4 * Ed

    def u(k, shape, scale=0.1):
        return jax.random.uniform(k, shape, jnp.float32, -scale, scale)

    ks = jax.random.split(key, 32)
    return {
        "lstm_r_w_ih": u(ks[0], (4 * H, 1)),
        "lstm_r_w_hh": u(ks[1], (4 * H, H)),
        "lstm_r_b_ih": u(ks[2], (4 * H,)),
        "lstm_r_b_hh": u(ks[3], (4 * H,)),
        "lstm_h_w_ih": u(ks[4], (4 * H, 1)),
        "lstm_h_w_hh": u(ks[5], (4 * H, H)),
        "lstm_h_b_ih": u(ks[6], (4 * H,)),
        "lstm_h_b_hh": u(ks[7], (4 * H,)),
        "fc_r1_w": u(ks[8], (16, H)), "fc_r1_b": u(ks[9], (16,)),
        "fc_h1_w": u(ks[10], (16, H)), "fc_h1_b": u(ks[11], (16,)),
        "emb_station": u(ks[12], (2000, Sd)),
        "emb_dcode": u(ks[13], (20, Ed)),
        "emb_timeslot": u(ks[14], (48, Ed)),
        "emb_dow": u(ks[15], (7, Ed)),
        "emb_we": u(ks[16], (2, Ed)),
        "fc_b1_w": u(ks[17], (128, E_in)), "fc_b1_b": u(ks[18], (128,)),
        "fc_b2_w": u(ks[19], (64, 128)), "fc_b2_b": u(ks[20], (64,)),
        "fc_b3_w": u(ks[21], (64, 64)), "fc_b3_b": u(ks[22], (64,)),
        "fc_cat_w": u(ks[23], (64, 32 + 64)), "fc_cat_b": u(ks[24], (64,)),
        "top_w": u(ks[25], (1, 64)), "top_b": u(ks[26], (1,)),
    }


if __name__ == "__main__":
    B = 2
    T = 8
    hidden_size = 32
    station_embedding_dim = 8
    embedding_dim = 4

    key = jax.random.PRNGKey(0)
    kp, kr, kh, kt, ks_ = jax.random.split(key, 5)

    params = init_params(kp, hidden_size, station_embedding_dim, embedding_dim)
    fused = jax.tree_util.tree_map(jax.block_until_ready,
                                   build_fused_params(params))  # offline, once

    r = jax.random.normal(kr, (B, T, 1), jnp.float32)
    h = jax.random.normal(kh, (B, T, 1), jnp.float32)
    t = jnp.stack([
        jax.random.randint(jax.random.fold_in(kt, 0), (B,), 0, 48),
        jax.random.randint(jax.random.fold_in(kt, 1), (B,), 0, 7),
        jax.random.randint(jax.random.fold_in(kt, 2), (B,), 0, 2),
    ], axis=1).astype(jnp.int32)
    s = jnp.stack([
        jax.random.randint(jax.random.fold_in(ks_, 0), (B,), 0, 2000),
        jax.random.randint(jax.random.fold_in(ks_, 1), (B,), 0, 20),
    ], axis=1).astype(jnp.int32)

    out = jax.block_until_ready(dcode_hybrid_forward(fused, r, h, t, s))
    ref = jax.block_until_ready(reference_forward(params, r, h, t, s))

    assert out.shape == (B, 1)
    assert bool(jnp.all(jnp.isfinite(out)))
    assert bool(jnp.all((out >= 0.0) & (out <= 1.0)))
    # Kernel uses bf16 MXU operands (per perf review) vs a HIGHEST-precision
    # f32 reference; observed drift is well below this tolerance.
    assert bool(jnp.allclose(out, ref, atol=5e-3, rtol=5e-3)), \
        f"mismatch: {out} vs {ref}"
    print("KERNEL_OK")
</pallas_src>

<mosaic_0001>
module attributes {stable_mosaic.version = 11 : i64} {
  func.func @dcode_fused_kernel(%arg0: memref<64x2xf32, #tpu.memory_space<vmem>>, %arg1: memref<8x24xf32, #tpu.memory_space<vmem>>, %arg2: memref<2x512xf32, #tpu.memory_space<vmem>>, %arg3: memref<1x512xf32, #tpu.memory_space<vmem>>, %arg4: memref<64x512xbf16, #tpu.memory_space<vmem>>, %arg5: memref<64x32xbf16, #tpu.memory_space<vmem>>, %arg6: memref<1x32xf32, #tpu.memory_space<vmem>>, %arg7: memref<24x128xbf16, #tpu.memory_space<vmem>>, %arg8: memref<1x128xf32, #tpu.memory_space<vmem>>, %arg9: memref<128x64xbf16, #tpu.memory_space<vmem>>, %arg10: memref<1x64xf32, #tpu.memory_space<vmem>>, %arg11: memref<64x64xbf16, #tpu.memory_space<vmem>>, %arg12: memref<1x64xf32, #tpu.memory_space<vmem>>, %arg13: memref<32x64xbf16, #tpu.memory_space<vmem>>, %arg14: memref<64x64xbf16, #tpu.memory_space<vmem>>, %arg15: memref<1x64xf32, #tpu.memory_space<vmem>>, %arg16: memref<64x128xbf16, #tpu.memory_space<vmem>>, %arg17: memref<1x128xf32, #tpu.memory_space<vmem>>, %arg18: memref<8x128xf32, #tpu.memory_space<vmem>>, %arg19: memref<64x512xf32, #tpu.memory_space<vmem>>) attributes {dimension_semantics = [], scalar_prefetch = 0 : i64, scratch_operands = 1 : i64, tpu.core_type = #tpu.core_type<tc>} {
    %c0 = arith.constant 0 : index
    %c0_0 = arith.constant 0 : index
    %0 = vector.load %arg0[%c0, %c0_0] : memref<64x2xf32, #tpu.memory_space<vmem>>, vector<64x2xf32>
    %c0_1 = arith.constant 0 : index
    %c0_2 = arith.constant 0 : index
    %1 = vector.load %arg2[%c0_1, %c0_2] : memref<2x512xf32, #tpu.memory_space<vmem>>, vector<2x512xf32>
    %cst = arith.constant dense<0.000000e+00> : vector<64x512xf32>
    %2 = tpu.matmul %0, %1, %cst {dimension_numbers = #tpu.dot_dimension_numbers<[1], [0], [0], [1], [0, 0, 1, 1], [], []>} : vector<64x2xf32>, vector<2x512xf32>, vector<64x512xf32> -> vector<64x512xf32>
    %c0_3 = arith.constant 0 : index
    %c0_4 = arith.constant 0 : index
    %3 = vector.load %arg3[%c0_3, %c0_4] : memref<1x512xf32, #tpu.memory_space<vmem>>, vector<1x512xf32>
    %4 = vector.broadcast %3 : vector<1x512xf32> to vector<64x512xf32>
    %5 = arith.addf %2, %4 : vector<64x512xf32>
    %c0_5 = arith.constant 0 : index
    %c0_6 = arith.constant 0 : index
    %6 = vector.load %arg19[%c0_5, %c0_6] : memref<64x512xf32, #tpu.memory_space<vmem>>, vector<64x512xf32>
    tpu.vector_store %arg19[%c0_5, %c0_6], %5 {strides = array<i32>} : memref<64x512xf32, #tpu.memory_space<vmem>>, vector<64x512xf32>,
    %c0_7 = arith.constant 0 : index
    %c0_8 = arith.constant 0 : index
    %7 = vector.load %arg4[%c0_7, %c0_8] : memref<64x512xbf16, #tpu.memory_space<vmem>>, vector<64x512xbf16>
    %cst_9 = arith.constant 0.000000e+00 : f32
    %8 = vector.broadcast %cst_9 : f32 to vector<8x64xf32>
    %cst_10 = arith.constant 0.000000e+00 : f32
    %9 = vector.broadcast %cst_10 : f32 to vector<8x64xf32>
    %c0_11 = arith.constant 0 : index
    %c0_12 = arith.constant 0 : index
    %10 = vector.load %arg19[%c0_11, %c0_12] : memref<64x512xf32, #tpu.memory_space<vmem>>, vector<8x512xf32>
    %11 = arith.truncf %8 : vector<8x64xf32> to vector<8x64xbf16>
    %cst_13 = arith.constant dense<0.000000e+00> : vector<8x512xf32>
    %12 = tpu.matmul %11, %7, %cst_13 {dimension_numbers = #tpu.dot_dimension_numbers<[1], [0], [0], [1], [0, 0, 1, 1], [], []>} : vector<8x64xbf16>, vector<64x512xbf16>, vector<8x512xf32> -> vector<8x512xf32>
    %13 = arith.addf %10, %12 : vector<8x512xf32>
    %14 = arith.negf %13 : vector<8x512xf32>
    %15 = math.exp %14 : vector<8x512xf32>
    %cst_14 = arith.constant 1.000000e+00 : f32
    %16 = vector.broadcast %cst_14 : f32 to vector<8x512xf32>
    %17 = arith.addf %16, %15 : vector<8x512xf32>
    %18 = arith.divf %16, %17 : vector<8x512xf32>
    %19 = vector.extract_strided_slice %18 {offsets = [0, 0], sizes = [8, 64], strides = [1, 1]} : vector<8x512xf32> to vector<8x64xf32>
    %20 = vector.extract_strided_slice %18 {offsets = [0, 128], sizes = [8, 64], strides = [1, 1]} : vector<8x512xf32> to vector<8x64xf32>
    %21 = vector.extract_strided_slice %18 {offsets = [0, 256], sizes = [8, 64], strides = [1, 1]} : vector<8x512xf32> to vector<8x64xf32>
    %cst_15 = arith.constant 2.000000e+00 : f32
    %22 = vector.broadcast %cst_15 : f32 to vector<8x64xf32>
    %23 = arith.mulf %22, %21 : vector<8x64xf32>
    %cst_16 = arith.constant 1.000000e+00 : f32
    %24 = vector.broadcast %cst_16 : f32 to vector<8x64xf32>
    %25 = arith.subf %23, %24 : vector<8x64xf32>
    %26 = vector.extract_strided_slice %18 {offsets = [0, 384], sizes = [8, 64], strides = [1, 1]} : vector<8x512xf32> to vector<8x64xf32>
    %27 = arith.mulf %20, %9 : vector<8x64xf32>
    %28 = arith.mulf %19, %25 : vector<8x64xf32>
    %29 = arith.addf %27, %28 : vector<8x64xf32>
    %30 = math.tanh %29 : vector<8x64xf32>
    %31 = arith.mulf %26, %30 : vector<8x64xf32>
    %c8 = arith.constant 8 : index
    %c0_17 = arith.constant 0 : index
    %32 = vector.load %arg19[%c8, %c0_17] : memref<64x512xf32, #tpu.memory_space<vmem>>, vector<8x512xf32>
    %33 = arith.truncf %31 : vector<8x64xf32> to vector<8x64xbf16>
    %cst_18 = arith.constant dense<0.000000e+00> : vector<8x512xf32>
    %34 = tpu.matmul %33, %7, %cst_18 {dimension_numbers = #tpu.dot_dimension_numbers<[1], [0], [0], [1], [0, 0, 1, 1], [], []>} : vector<8x64xbf16>, vector<64x512xbf16>, vector<8x512xf32> -> vector<8x512xf32>
    %35 = arith.addf %32, %34 : vector<8x512xf32>
    %36 = arith.negf %35 : vector<8x512xf32>
    %37 = math.exp %36 : vector<8x512xf32>
    %cst_19 = arith.constant 1.000000e+00 : f32
    %38 = vector.broadcast %cst_19 : f32 to vector<8x512xf32>
    %39 = arith.addf %38, %37 : vector<8x512xf32>
    %40 = arith.divf %38, %39 : vector<8x512xf32>
    %41 = vector.extract_strided_slice %40 {offsets = [0, 0], sizes = [8, 64], strides = [1, 1]} : vector<8x512xf32> to vector<8x64xf32>
    %42 = vector.extract_strided_slice %40 {offsets = [0, 128], sizes = [8, 64], strides = [1, 1]} : vector<8x512xf32> to vector<8x64xf32>
    %43 = vector.extract_strided_slice %40 {offsets = [0, 256], sizes = [8, 64], strides = [1, 1]} : vector<8x512xf32> to vector<8x64xf32>
    %cst_20 = arith.constant 2.000000e+00 : f32
    %44 = vector.broadcast %cst_20 : f32 to vector<8x64xf32>
    %45 = arith.mulf %44, %43 : vector<8x64xf32>
    %cst_21 = arith.constant 1.000000e+00 : f32
    %46 = vector.broadcast %cst_21 : f32 to vector<8x64xf32>
    %47 = arith.subf %45, %46 : vector<8x64xf32>
    %48 = vector.extract_strided_slice %40 {offsets = [0, 384], sizes = [8, 64], strides = [1, 1]} : vector<8x512xf32> to vector<8x64xf32>
    %49 = arith.mulf %42, %29 : vector<8x64xf32>
    %50 = arith.mulf %41, %47 : vector<8x64xf32>
    %51 = arith.addf %49, %50 : vector<8x64xf32>
    %52 = math.tanh %51 : vector<8x64xf32>
    %53 = arith.mulf %48, %52 : vector<8x64xf32>
    %c16 = arith.constant 16 : index
    %c0_22 = arith.constant 0 : index
    %54 = vector.load %arg19[%c16, %c0_22] : memref<64x512xf32, #tpu.memory_space<vmem>>, vector<8x512xf32>
    %55 = arith.truncf %53 : vector<8x64xf32> to vector<8x64xbf16>
    %cst_23 = arith.constant dense<0.000000e+00> : vector<8x512xf32>
    %56 = tpu.matmul %55, %7, %cst_23 {dimension_numbers = #tpu.dot_dimension_numbers<[1], [0], [0], [1], [0, 0, 1, 1], [], []>} : vector<8x64xbf16>, vector<64x512xbf16>, vector<8x512xf32> -> vector<8x512xf32>
    %57 = arith.addf %54, %56 : vector<8x512xf32>
    %58 = arith.negf %57 : vector<8x512xf32>
    %59 = math.exp %58 : vector<8x512xf32>
    %cst_24 = arith.constant 1.000000e+00 : f32
    %60 = vector.broadcast %cst_24 : f32 to vector<8x512xf32>
    %61 = arith.addf %60, %59 : vector<8x512xf32>
    %62 = arith.divf %60, %61 : vector<8x512xf32>
    %63 = vector.extract_strided_slice %62 {offsets = [0, 0], sizes = [8, 64], strides = [1, 1]} : vector<8x512xf32> to vector<8x64xf32>
    %64 = vector.extract_strided_slice %62 {offsets = [0, 128], sizes = [8, 64], strides = [1, 1]} : vector<8x512xf32> to vector<8x64xf32>
    %65 = vector.extract_strided_slice %62 {offsets = [0, 256], sizes = [8, 64], strides = [1, 1]} : vector<8x512xf32> to vector<8x64xf32>
    %cst_25 = arith.constant 2.000000e+00 : f32
    %66 = vector.broadcast %cst_25 : f32 to vector<8x64xf32>
    %67 = arith.mulf %66, %65 : vector<8x64xf32>
    %cst_26 = arith.constant 1.000000e+00 : f32
    %68 = vector.broadcast %cst_26 : f32 to vector<8x64xf32>
    %69 = arith.subf %67, %68 : vector<8x64xf32>
    %70 = vector.extract_strided_slice %62 {offsets = [0, 384], sizes = [8, 64], strides = [1, 1]} : vector<8x512xf32> to vector<8x64xf32>
    %71 = arith.mulf %64, %51 : vector<8x64xf32>
    %72 = arith.mulf %63, %69 : vector<8x64xf32>
    %73 = arith.addf %71, %72 : vector<8x64xf32>
    %74 = math.tanh %73 : vector<8x64xf32>
    %75 = arith.mulf %70, %74 : vector<8x64xf32>
    %c24 = arith.constant 24 : index
    %c0_27 = arith.constant 0 : index
    %76 = vector.load %arg19[%c24, %c0_27] : memref<64x512xf32, #tpu.memory_space<vmem>>, vector<8x512xf32>
    %77 = arith.truncf %75 : vector<8x64xf32> to vector<8x64xbf16>
    %cst_28 = arith.constant dense<0.000000e+00> : vector<8x512xf32>
    %78 = tpu.matmul %77, %7, %cst_28 {dimension_numbers = #tpu.dot_dimension_numbers<[1], [0], [0], [1], [0, 0, 1, 1], [], []>} : vector<8x64xbf16>, vector<64x512xbf16>, vector<8x512xf32> -> vector<8x512xf32>
    %79 = arith.addf %76, %78 : vector<8x512xf32>
    %80 = arith.negf %79 : vector<8x512xf32>
    %81 = math.exp %80 : vector<8x512xf32>
    %cst_29 = arith.constant 1.000000e+00 : f32
    %82 = vector.broadcast %cst_29 : f32 to vector<8x512xf32>
    %83 = arith.addf %82, %81 : vector<8x512xf32>
    %84 = arith.divf %82, %83 : vector<8x512xf32>
    %85 = vector.extract_strided_slice %84 {offsets = [0, 0], sizes = [8, 64], strides = [1, 1]} : vector<8x512xf32> to vector<8x64xf32>
    %86 = vector.extract_strided_slice %84 {offsets = [0, 128], sizes = [8, 64], strides = [1, 1]} : vector<8x512xf32> to vector<8x64xf32>
    %87 = vector.extract_strided_slice %84 {offsets = [0, 256], sizes = [8, 64], strides = [1, 1]} : vector<8x512xf32> to vector<8x64xf32>
    %cst_30 = arith.constant 2.000000e+00 : f32
    %88 = vector.broadcast %cst_30 : f32 to vector<8x64xf32>
    %89 = arith.mulf %88, %87 : vector<8x64xf32>
    %cst_31 = arith.constant 1.000000e+00 : f32
    %90 = vector.broadcast %cst_31 : f32 to vector<8x64xf32>
    %91 = arith.subf %89, %90 : vector<8x64xf32>
    %92 = vector.extract_strided_slice %84 {offsets = [0, 384], sizes = [8, 64], strides = [1, 1]} : vector<8x512xf32> to vector<8x64xf32>
    %93 = arith.mulf %86, %73 : vector<8x64xf32>
    %94 = arith.mulf %85, %91 : vector<8x64xf32>
    %95 = arith.addf %93, %94 : vector<8x64xf32>
    %96 = math.tanh %95 : vector<8x64xf32>
    %97 = arith.mulf %92, %96 : vector<8x64xf32>
    %c32 = arith.constant 32 : index
    %c0_32 = arith.constant 0 : index
    %98 = vector.load %arg19[%c32, %c0_32] : memref<64x512xf32, #tpu.memory_space<vmem>>, vector<8x512xf32>
    %99 = arith.truncf %97 : vector<8x64xf32> to vector<8x64xbf16>
    %cst_33 = arith.constant dense<0.000000e+00> : vector<8x512xf32>
    %100 = tpu.matmul %99, %7, %cst_33 {dimension_numbers = #tpu.dot_dimension_numbers<[1], [0], [0], [1], [0, 0, 1, 1], [], []>} : vector<8x64xbf16>, vector<64x512xbf16>, vector<8x512xf32> -> vector<8x512xf32>
    %101 = arith.addf %98, %100 : vector<8x512xf32>
    %102 = arith.negf %101 : vector<8x512xf32>
    %103 = math.exp %102 : vector<8x512xf32>
    %cst_34 = arith.constant 1.000000e+00 : f32
    %104 = vector.broadcast %cst_34 : f32 to vector<8x512xf32>
    %105 = arith.addf %104, %103 : vector<8x512xf32>
    %106 = arith.divf %104, %105 : vector<8x512xf32>
    %107 = vector.extract_strided_slice %106 {offsets = [0, 0], sizes = [8, 64], strides = [1, 1]} : vector<8x512xf32> to vector<8x64xf32>
    %108 = vector.extract_strided_slice %106 {offsets = [0, 128], sizes = [8, 64], strides = [1, 1]} : vector<8x512xf32> to vector<8x64xf32>
    %109 = vector.extract_strided_slice %106 {offsets = [0, 256], sizes = [8, 64], strides = [1, 1]} : vector<8x512xf32> to vector<8x64xf32>
    %cst_35 = arith.constant 2.000000e+00 : f32
    %110 = vector.broadcast %cst_35 : f32 to vector<8x64xf32>
    %111 = arith.mulf %110, %109 : vector<8x64xf32>
    %cst_36 = arith.constant 1.000000e+00 : f32
    %112 = vector.broadcast %cst_36 : f32 to vector<8x64xf32>
    %113 = arith.subf %111, %112 : vector<8x64xf32>
    %114 = vector.extract_strided_slice %106 {offsets = [0, 384], sizes = [8, 64], strides = [1, 1]} : vector<8x512xf32> to vector<8x64xf32>
    %115 = arith.mulf %108, %95 : vector<8x64xf32>
    %116 = arith.mulf %107, %113 : vector<8x64xf32>
    %117 = arith.addf %115, %116 : vector<8x64xf32>
    %118 = math.tanh %117 : vector<8x64xf32>
    %119 = arith.mulf %114, %118 : vector<8x64xf32>
    %c40 = arith.constant 40 : index
    %c0_37 = arith.constant 0 : index
    %120 = vector.load %arg19[%c40, %c0_37] : memref<64x512xf32, #tpu.memory_space<vmem>>, vector<8x512xf32>
    %121 = arith.truncf %119 : vector<8x64xf32> to vector<8x64xbf16>
    %cst_38 = arith.constant dense<0.000000e+00> : vector<8x512xf32>
    %122 = tpu.matmul %121, %7, %cst_38 {dimension_numbers = #tpu.dot_dimension_numbers<[1], [0], [0], [1], [0, 0, 1, 1], [], []>} : vector<8x64xbf16>, vector<64x512xbf16>, vector<8x512xf32> -> vector<8x512xf32>
    %123 = arith.addf %120, %122 : vector<8x512xf32>
    %124 = arith.negf %123 : vector<8x512xf32>
    %125 = math.exp %124 : vector<8x512xf32>
    %cst_39 = arith.constant 1.000000e+00 : f32
    %126 = vector.broadcast %cst_39 : f32 to vector<8x512xf32>
    %127 = arith.addf %126, %125 : vector<8x512xf32>
    %128 = arith.divf %126, %127 : vector<8x512xf32>
    %129 = vector.extract_strided_slice %128 {offsets = [0, 0], sizes = [8, 64], strides = [1, 1]} : vector<8x512xf32> to vector<8x64xf32>
    %130 = vector.extract_strided_slice %128 {offsets = [0, 128], sizes = [8, 64], strides = [1, 1]} : vector<8x512xf32> to vector<8x64xf32>
    %131 = vector.extract_strided_slice %128 {offsets = [0, 256], sizes = [8, 64], strides = [1, 1]} : vector<8x512xf32> to vector<8x64xf32>
    %cst_40 = arith.constant 2.000000e+00 : f32
    %132 = vector.broadcast %cst_40 : f32 to vector<8x64xf32>
    %133 = arith.mulf %132, %131 : vector<8x64xf32>
    %cst_41 = arith.constant 1.000000e+00 : f32
    %134 = vector.broadcast %cst_41 : f32 to vector<8x64xf32>
    %135 = arith.subf %133, %134 : vector<8x64xf32>
    %136 = vector.extract_strided_slice %128 {offsets = [0, 384], sizes = [8, 64], strides = [1, 1]} : vector<8x512xf32> to vector<8x64xf32>
    %137 = arith.mulf %130, %117 : vector<8x64xf32>
    %138 = arith.mulf %129, %135 : vector<8x64xf32>
    %139 = arith.addf %137, %138 : vector<8x64xf32>
    %140 = math.tanh %139 : vector<8x64xf32>
    %141 = arith.mulf %136, %140 : vector<8x64xf32>
    %c48 = arith.constant 48 : index
    %c0_42 = arith.constant 0 : index
    %142 = vector.load %arg19[%c48, %c0_42] : memref<64x512xf32, #tpu.memory_space<vmem>>, vector<8x512xf32>
    %143 = arith.truncf %141 : vector<8x64xf32> to vector<8x64xbf16>
    %cst_43 = arith.constant dense<0.000000e+00> : vector<8x512xf32>
    %144 = tpu.matmul %143, %7, %cst_43 {dimension_numbers = #tpu.dot_dimension_numbers<[1], [0], [0], [1], [0, 0, 1, 1], [], []>} : vector<8x64xbf16>, vector<64x512xbf16>, vector<8x512xf32> -> vector<8x512xf32>
    %145 = arith.addf %142, %144 : vector<8x512xf32>
    %146 = arith.negf %145 : vector<8x512xf32>
    %147 = math.exp %146 : vector<8x512xf32>
    %cst_44 = arith.constant 1.000000e+00 : f32
    %148 = vector.broadcast %cst_44 : f32 to vector<8x512xf32>
    %149 = arith.addf %148, %147 : vector<8x512xf32>
    %150 = arith.divf %148, %149 : vector<8x512xf32>
    %151 = vector.extract_strided_slice %150 {offsets = [0, 0], sizes = [8, 64], strides = [1, 1]} : vector<8x512xf32> to vector<8x64xf32>
    %152 = vector.extract_strided_slice %150 {offsets = [0, 128], sizes = [8, 64], strides = [1, 1]} : vector<8x512xf32> to vector<8x64xf32>
    %153 = vector.extract_strided_slice %150 {offsets = [0, 256], sizes = [8, 64], strides = [1, 1]} : vector<8x512xf32> to vector<8x64xf32>
    %cst_45 = arith.constant 2.000000e+00 : f32
    %154 = vector.broadcast %cst_45 : f32 to vector<8x64xf32>
    %155 = arith.mulf %154, %153 : vector<8x64xf32>
    %cst_46 = arith.constant 1.000000e+00 : f32
    %156 = vector.broadcast %cst_46 : f32 to vector<8x64xf32>
    %157 = arith.subf %155, %156 : vector<8x64xf32>
    %158 = vector.extract_strided_slice %150 {offsets = [0, 384], sizes = [8, 64], strides = [1, 1]} : vector<8x512xf32> to vector<8x64xf32>
    %159 = arith.mulf %152, %139 : vector<8x64xf32>
    %160 = arith.mulf %151, %157 : vector<8x64xf32>
    %161 = arith.addf %159, %160 : vector<8x64xf32>
    %162 = math.tanh %161 : vector<8x64xf32>
    %163 = arith.mulf %158, %162 : vector<8x64xf32>
    %c56 = arith.constant 56 : index
    %c0_47 = arith.constant 0 : index
    %164 = vector.load %arg19[%c56, %c0_47] : memref<64x512xf32, #tpu.memory_space<vmem>>, vector<8x512xf32>
    %165 = arith.truncf %163 : vector<8x64xf32> to vector<8x64xbf16>
    %cst_48 = arith.constant dense<0.000000e+00> : vector<8x512xf32>
    %166 = tpu.matmul %165, %7, %cst_48 {dimension_numbers = #tpu.dot_dimension_numbers<[1], [0], [0], [1], [0, 0, 1, 1], [], []>} : vector<8x64xbf16>, vector<64x512xbf16>, vector<8x512xf32> -> vector<8x512xf32>
    %167 = arith.addf %164, %166 : vector<8x512xf32>
    %168 = arith.negf %167 : vector<8x512xf32>
    %169 = math.exp %168 : vector<8x512xf32>
    %cst_49 = arith.constant 1.000000e+00 : f32
    %170 = vector.broadcast %cst_49 : f32 to vector<8x512xf32>
    %171 = arith.addf %170, %169 : vector<8x512xf32>
    %172 = arith.divf %170, %171 : vector<8x512xf32>
    %173 = vector.extract_strided_slice %172 {offsets = [0, 0], sizes = [8, 64], strides = [1, 1]} : vector<8x512xf32> to vector<8x64xf32>
    %174 = vector.extract_strided_slice %172 {offsets = [0, 128], sizes = [8, 64], strides = [1, 1]} : vector<8x512xf32> to vector<8x64xf32>
    %175 = vector.extract_strided_slice %172 {offsets = [0, 256], sizes = [8, 64], strides = [1, 1]} : vector<8x512xf32> to vector<8x64xf32>
    %cst_50 = arith.constant 2.000000e+00 : f32
    %176 = vector.broadcast %cst_50 : f32 to vector<8x64xf32>
    %177 = arith.mulf %176, %175 : vector<8x64xf32>
    %cst_51 = arith.constant 1.000000e+00 : f32
    %178 = vector.broadcast %cst_51 : f32 to vector<8x64xf32>
    %179 = arith.subf %177, %178 : vector<8x64xf32>
    %180 = vector.extract_strided_slice %172 {offsets = [0, 384], sizes = [8, 64], strides = [1, 1]} : vector<8x512xf32> to vector<8x64xf32>
    %181 = arith.mulf %174, %161 : vector<8x64xf32>
    %182 = arith.mulf %173, %179 : vector<8x64xf32>
    %183 = arith.addf %181, %182 : vector<8x64xf32>
    %184 = math.tanh %183 : vector<8x64xf32>
    %185 = arith.mulf %180, %184 : vector<8x64xf32>
    %c0_52 = arith.constant 0 : index
    %c0_53 = arith.constant 0 : index
    %186 = vector.load %arg5[%c0_52, %c0_53] : memref<64x32xbf16, #tpu.memory_space<vmem>>, vector<64x32xbf16>
    %187 = arith.truncf %185 : vector<8x64xf32> to vector<8x64xbf16>
    %cst_54 = arith.constant dense<0.000000e+00> : vector<8x32xf32>
    %188 = tpu.matmul %187, %186, %cst_54 {dimension_numbers = #tpu.dot_dimension_numbers<[1], [0], [0], [1], [0, 0, 1, 1], [], []>} : vector<8x64xbf16>, vector<64x32xbf16>, vector<8x32xf32> -> vector<8x32xf32>
    %c0_55 = arith.constant 0 : index
    %c0_56 = arith.constant 0 : index
    %189 = vector.load %arg6[%c0_55, %c0_56] : memref<1x32xf32, #tpu.memory_space<vmem>>, vector<1x32xf32>
    %190 = vector.broadcast %189 : vector<1x32xf32> to vector<8x32xf32>
    %191 = arith.addf %188, %190 : vector<8x32xf32>
    %cst_57 = arith.constant 0.000000e+00 : f32
    %192 = vector.broadcast %cst_57 : f32 to vector<8x32xf32>
    %193 = arith.maximumf %191, %192 : vector<8x32xf32>
    %c0_58 = arith.constant 0 : index
    %c0_59 = arith.constant 0 : index
    %194 = vector.load %arg1[%c0_58, %c0_59] : memref<8x24xf32, #tpu.memory_space<vmem>>, vector<8x24xf32>
    %c0_60 = arith.constant 0 : index
    %c0_61 = arith.constant 0 : index
    %195 = vector.load %arg7[%c0_60, %c0_61] : memref<24x128xbf16, #tpu.memory_space<vmem>>, vector<24x128xbf16>
    %196 = arith.truncf %194 : vector<8x24xf32> to vector<8x24xbf16>
    %cst_62 = arith.constant dense<0.000000e+00> : vector<8x128xf32>
    %197 = tpu.matmul %196, %195, %cst_62 {dimension_numbers = #tpu.dot_dimension_numbers<[1], [0], [0], [1], [0, 0, 1, 1], [], []>} : vector<8x24xbf16>, vector<24x128xbf16>, vector<8x128xf32> -> vector<8x128xf32>
    %c0_63 = arith.constant 0 : index
    %c0_64 = arith.constant 0 : index
    %198 = vector.load %arg8[%c0_63, %c0_64] : memref<1x128xf32, #tpu.memory_space<vmem>>, vector<1x128xf32>
    %199 = vector.broadcast %198 : vector<1x128xf32> to vector<8x128xf32>
    %200 = arith.addf %197, %199 : vector<8x128xf32>
    %cst_65 = arith.constant 0.000000e+00 : f32
    %201 = vector.broadcast %cst_65 : f32 to vector<8x128xf32>
    %202 = arith.maximumf %200, %201 : vector<8x128xf32>
    %c0_66 = arith.constant 0 : index
    %c0_67 = arith.constant 0 : index
    %203 = vector.load %arg9[%c0_66, %c0_67] : memref<128x64xbf16, #tpu.memory_space<vmem>>, vector<128x64xbf16>
    %204 = arith.truncf %202 : vector<8x128xf32> to vector<8x128xbf16>
    %cst_68 = arith.constant dense<0.000000e+00> : vector<8x64xf32>
    %205 = tpu.matmul %204, %203, %cst_68 {dimension_numbers = #tpu.dot_dimension_numbers<[1], [0], [0], [1], [0, 0, 1, 1], [], []>} : vector<8x128xbf16>, vector<128x64xbf16>, vector<8x64xf32> -> vector<8x64xf32>
    %c0_69 = arith.constant 0 : index
    %c0_70 = arith.constant 0 : index
    %206 = vector.load %arg10[%c0_69, %c0_70] : memref<1x64xf32, #tpu.memory_space<vmem>>, vector<1x64xf32>
    %207 = vector.broadcast %206 : vector<1x64xf32> to vector<8x64xf32>
    %208 = arith.addf %205, %207 : vector<8x64xf32>
    %cst_71 = arith.constant 0.000000e+00 : f32
    %209 = vector.broadcast %cst_71 : f32 to vector<8x64xf32>
    %210 = arith.maximumf %208, %209 : vector<8x64xf32>
    %c0_72 = arith.constant 0 : index
    %c0_73 = arith.constant 0 : index
    %211 = vector.load %arg11[%c0_72, %c0_73] : memref<64x64xbf16, #tpu.memory_space<vmem>>, vector<64x64xbf16>
    %212 = arith.truncf %210 : vector<8x64xf32> to vector<8x64xbf16>
    %cst_74 = arith.constant dense<0.000000e+00> : vector<8x64xf32>
    %213 = tpu.matmul %212, %211, %cst_74 {dimension_numbers = #tpu.dot_dimension_numbers<[1], [0], [0], [1], [0, 0, 1, 1], [], []>} : vector<8x64xbf16>, vector<64x64xbf16>, vector<8x64xf32> -> vector<8x64xf32>
    %c0_75 = arith.constant 0 : index
    %c0_76 = arith.constant 0 : index
    %214 = vector.load %arg12[%c0_75, %c0_76] : memref<1x64xf32, #tpu.memory_space<vmem>>, vector<1x64xf32>
    %215 = vector.broadcast %214 : vector<1x64xf32> to vector<8x64xf32>
    %216 = arith.addf %213, %215 : vector<8x64xf32>
    %cst_77 = arith.constant 0.000000e+00 : f32
    %217 = vector.broadcast %cst_77 : f32 to vector<8x64xf32>
    %218 = arith.maximumf %216, %217 : vector<8x64xf32>
    %c0_78 = arith.constant 0 : index
    %c0_79 = arith.constant 0 : index
    %219 = vector.load %arg13[%c0_78, %c0_79] : memref<32x64xbf16, #tpu.memory_space<vmem>>, vector<32x64xbf16>
    %220 = arith.truncf %193 : vector<8x32xf32> to vector<8x32xbf16>
    %cst_80 = arith.constant dense<0.000000e+00> : vector<8x64xf32>
    %221 = tpu.matmul %220, %219, %cst_80 {dimension_numbers = #tpu.dot_dimension_numbers<[1], [0], [0], [1], [0, 0, 1, 1], [], []>} : vector<8x32xbf16>, vector<32x64xbf16>, vector<8x64xf32> -> vector<8x64xf32>
    %c0_81 = arith.constant 0 : index
    %c0_82 = arith.constant 0 : index
    %222 = vector.load %arg14[%c0_81, %c0_82] : memref<64x64xbf16, #tpu.memory_space<vmem>>, vector<64x64xbf16>
    %223 = arith.truncf %218 : vector<8x64xf32> to vector<8x64xbf16>
    %cst_83 = arith.constant dense<0.000000e+00> : vector<8x64xf32>
    %224 = tpu.matmul %223, %222, %cst_83 {dimension_numbers = #tpu.dot_dimension_numbers<[1], [0], [0], [1], [0, 0, 1, 1], [], []>} : vector<8x64xbf16>, vector<64x64xbf16>, vector<8x64xf32> -> vector<8x64xf32>
    %225 = arith.addf %221, %224 : vector<8x64xf32>
    %c0_84 = arith.constant 0 : index
    %c0_85 = arith.constant 0 : index
    %226 = vector.load %arg15[%c0_84, %c0_85] : memref<1x64xf32, #tpu.memory_space<vmem>>, vector<1x64xf32>
    %227 = vector.broadcast %226 : vector<1x64xf32> to vector<8x64xf32>
    %228 = arith.addf %225, %227 : vector<8x64xf32>
    %cst_86 = arith.constant 0.000000e+00 : f32
    %229 = vector.broadcast %cst_86 : f32 to vector<8x64xf32>
    %230 = arith.maximumf %228, %229 : vector<8x64xf32>
    %c0_87 = arith.constant 0 : index
    %c0_88 = arith.constant 0 : index
    %231 = vector.load %arg16[%c0_87, %c0_88] : memref<64x128xbf16, #tpu.memory_space<vmem>>, vector<64x128xbf16>
    %232 = arith.truncf %230 : vector<8x64xf32> to vector<8x64xbf16>
    %cst_89 = arith.constant dense<0.000000e+00> : vector<8x128xf32>
    %233 = tpu.matmul %232, %231, %cst_89 {dimension_numbers = #tpu.dot_dimension_numbers<[1], [0], [0], [1], [0, 0, 1, 1], [], []>} : vector<8x64xbf16>, vector<64x128xbf16>, vector<8x128xf32> -> vector<8x128xf32>
    %c0_90 = arith.constant 0 : index
    %c0_91 = arith.constant 0 : index
    %234 = vector.load %arg17[%c0_90, %c0_91] : memref<1x128xf32, #tpu.memory_space<vmem>>, vector<1x128xf32>
    %235 = vector.broadcast %234 : vector<1x128xf32> to vector<8x128xf32>
    %236 = arith.addf %233, %235 : vector<8x128xf32>
    %237 = arith.negf %236 : vector<8x128xf32>
    %238 = math.exp %237 : vector<8x128xf32>
    %cst_92 = arith.constant 1.000000e+00 : f32
    %239 = vector.broadcast %cst_92 : f32 to vector<8x128xf32>
    %240 = arith.addf %239, %238 : vector<8x128xf32>
    %241 = arith.divf %239, %240 : vector<8x128xf32>
    %c0_93 = arith.constant 0 : index
    %c0_94 = arith.constant 0 : index
    %242 = vector.load %arg18[%c0_93, %c0_94] : memref<8x128xf32, #tpu.memory_space<vmem>>, vector<8x128xf32>
    tpu.vector_store %arg18[%c0_93, %c0_94], %241 {strides = array<i32>} : memref<8x128xf32, #tpu.memory_space<vmem>>, vector<8x128xf32>,
    return
  }
}

</mosaic_0001>

<bundles_post_ra>
// kernel: dcode_hybrid_forward.1
= control target key start
LH: loop header
LB: loop body
LE: loop exit
PB: predicated region body
PF: predicated region fallthrough
CT: control target
= control target key end

     0   :  { %v71_v0 = vlaneseq  ;;  %v2555_v1 = vmov 1983009808   ;;  %v3310_v3 = vmov 0.0   ;;  %vm134_vm0 = vcmask 1041408   ;;  %s3289_s2 = inlined_call_operand.vmem [shape: f32[2,512], index: 2, kind: input, shape index: {}]   ;;  %s3290_s4 = inlined_call_operand.vmem [shape: bf16[64,512], index: 4, kind: input, shape index: {}]   ;;  %s3291_s0 = inlined_call_operand.vmem [shape: f32[64,2], index: 0, kind: input, shape index: {}]   ;;  %s3292_s3 = inlined_call_operand.vmem [shape: f32[1,512], index: 3, kind: input, shape index: {}]   ;;  %s3293_s7 = inlined_call_operand.vmem [shape: bf16[24,128], index: 7, kind: input, shape index: {}]   ;;  %s3294_s9 = inlined_call_operand.vmem [shape: bf16[128,64], index: 9, kind: input, shape index: {}]   ;;  %s3295_s1 = inlined_call_operand.vmem [shape: f32[8,24], index: 1, kind: input, shape index: {}]   ;;  %s3296_s5 = inlined_call_operand.vmem [shape: bf16[64,32], index: 5, kind: input, shape index: {}]   ;;  %s3297_s11 = inlined_call_operand.vmem [shape: bf16[64,64], index: 11, kind: input, shape index: {}]   ;;  %s3298_s8 = inlined_call_operand.vmem [shape: f32[1,128], index: 8, kind: input, shape index: {}]   ;;  %s3299_s13 = inlined_call_operand.vmem [shape: bf16[32,64], index: 13, kind: input, shape index: {}]   ;;  %s3300_s14 = inlined_call_operand.vmem [shape: bf16[64,64], index: 14, kind: input, shape index: {}]   ;;  %s3301_s10 = inlined_call_operand.vmem [shape: f32[1,64], index: 10, kind: input, shape index: {}]   ;;  %s3302_s6 = inlined_call_operand.vmem [shape: f32[1,32], index: 6, kind: input, shape index: {}]   ;;  %s3303_s16 = inlined_call_operand.vmem [shape: bf16[64,128], index: 16, kind: input, shape index: {}]   ;;  %s3304_s12 = inlined_call_operand.vmem [shape: f32[1,64], index: 12, kind: input, shape index: {}]   ;;  %s3305_s15 = inlined_call_operand.vmem [shape: f32[1,64], index: 15, kind: input, shape index: {}]   ;;  %s3306_s17 = inlined_call_operand.vmem [shape: f32[1,128], index: 17, kind: input, shape index: {}]   ;;  %s3307_s18 = inlined_call_operand.vmem [shape: f32[8,128], index: 18, kind: output, shape index: {}]  }
   0x1   :  { %3314 = sst [smem:[#allocation6_spill]] %s3289_s2  ;;  %v94_v2 = vunpack.c.l.s4 %v2555_v1  ;;  %207 = vmatprep.mubr.f32.mxu0 %v3310_v3  ;;  %243 = vmatprep.mubr.f32.mxu1 %v3310_v3  ;;  %vm109_vm1 = vcmask 15360   ;;  %v3312_v37 = vmov 0   ;;  %v69_v39 = vld [vmem:[%s3292_s3] sm:$0xf]  ;;  %vm501_vm2 = vcmask 523264  }
   0x2   :  { %3315 = sst [smem:[#allocation7_spill]] %s3290_s4  ;;  %v2659_v5 = vshrl.u32 %v71_v0, 7  ;;  %vm1606_vm3 = vcmask 1043456   ;;  %vm2558_vm4 = vmmov 0   ;;  %vm1602_vm5 = vcmask 195584  }
   0x3   :  { %3316 = sst [smem:[#allocation8_spill]] %s3291_s0  ;;  %v95_v7 = vunpack.c.0.s8 %v94_v2  ;;  %vm1941_vm6 = vcmask 261120  }
   0x4   :  { %s3317_s29 = sld [smem:[#allocation6_spill]]  ;;  %v73_v38 = vsub.s32 0, %v2659_v5  ;;  %v77_v40 = vsub.s32 1, %v2659_v5  ;;  %v81_v57 = vsub.s32 2, %v2659_v5  ;;  %v85_v61 = vsub.s32 3, %v2659_v5 }
   0x5   :  { %v98_v8 = vsub.s32 %v95_v7, %v2659_v5  ;;  %s3318_s19 = sld [smem:[#allocation8_spill]] }
   0x6   :  { %s3319_s0 = sld [smem:[#allocation7_spill]]  ;;  %v2855_v41 = vrot.slane %v69_v39, %v73_v38  ;;  %v2857_v42 = vrot.slane %v69_v39, %v77_v40  ;;  %v82_v0 = vrot.slane %v69_v39, %v81_v57 }
   0xa   :  { %v68_v4 = vld [vmem:[%s3317_s29] sm:$0xff] }
   0xb   :  { %v92_v6 = vcombine.high %v68_v4, %v68_v4  ;;  %v99_v9 = vrot.slane %v68_v4, %v98_v8  ;;  %v60_v12 = vld [vmem:[%s3318_s19] sm:$0xff]  ;;  %v2668_v13 = vld [vmem:[%s3318_s19 + $0x30] sm:$0xff]  ;;  %v61_v17 = vld [vmem:[%s3318_s19 + $0x8] sm:$0xff] }
   0xc   :  { %v2675_v15 = vld [vmem:[%s3319_s0 + $0x64] ss:$16 sps:$4 sm:$0xff]   ;;  %v2682_v16 = vld [vmem:[%s3319_s0 + $0x6c] ss:$16 sps:$4 sm:$0xff]   ;;  %v2702_v19 = vld [vmem:[%s3319_s0 + $0x60] ss:$16 sps:$4 sm:$0xff]  }
   0xd   :  { %v106_v10 = vrot.slane %v92_v6, %v98_v8  ;;  %v107_v11 = vcombine.high %v99_v9, %v99_v9  ;;  %v2695_v18 = vld [vmem:[%s3318_s19 + $0x38] sm:$0xff]  ;;  %v2709_v20 = vld [vmem:[%s3319_s0 + $0x44] ss:$16 sps:$4 sm:$0xff]   ;;  %v2728_v23 = vld [vmem:[%s3319_s0 + $0x40] ss:$16 sps:$4 sm:$0xff]   ;;  %v86_v6 = vrot.slane %v69_v39, %v85_v61 }
   0xe   :  { %v62_v21 = vld [vmem:[%s3318_s19 + $0x10] sm:$0xff]  ;;  %v2722_v22 = vld [vmem:[%s3319_s0 + $0x68] ss:$16 sps:$4 sm:$0xff]   ;;  %v2739_v25 = vld [vmem:[%s3319_s0 + $0x4c] ss:$16 sps:$4 sm:$0xff]  }
   0xf   :  { %v108_v14 = vcombine.high %v106_v10, %v106_v10  ;;  %2088 = vmatprep.subr.msk.mxu0 %vm134_vm0, %v107_v11  ;;  %2338 = vmatprep.subr.msk.mxu1 %vm134_vm0, %v107_v11  ;;  %v2734_v24 = vld [vmem:[%s3319_s0 + $0x24] ss:$16 sps:$4 sm:$0xff]   ;;  %v63_v26 = vld [vmem:[%s3318_s19 + $0x18] sm:$0xff]  ;;  %v2753_v27 = vld [vmem:[%s3319_s0 + $0x20] ss:$16 sps:$4 sm:$0xff]  }
  0x10   :  { %2089 = vmatpush1.msk.msra.mxu0 %vm134_vm0, %v99_v9  ;;  %2339 = vmatpush1.msk.msra.mxu1 %vm134_vm0, %v99_v9  ;;  %v2758_v28 = vld [vmem:[%s3319_s0 + $0x48] ss:$16 sps:$4 sm:$0xff]   ;;  %v2765_v29 = vld [vmem:[%s3319_s0 + $0x4] ss:$16 sps:$4 sm:$0xff]   ;;  %v2770_v30 = vld [vmem:[%s3319_s0 + $0x2c] ss:$16 sps:$4 sm:$0xff]  }
  0x11   :  { %2090 = vmatmul.mubr.msk.f32.vlgmr.msra.gmra.mxu0 %vm109_vm1, %v60_v12  ;;  %2096 = vmatmul.mubr.msk.f32.vlgmr.msra.gmra.mxu1 %vm109_vm1, %v2668_v13  ;;  %v64_v31 = vld [vmem:[%s3318_s19 + $0x20] sm:$0xff]  ;;  %v2789_v33 = vld [vmem:[%s3319_s0 + $0x28] ss:$16 sps:$4 sm:$0xff]   ;;  %v2796_v34 = vld [vmem:[%s3319_s0 + $0xc] ss:$16 sps:$4 sm:$0xff]  }
  0x12   :  { %2098 = vmatprep.subr.msk.mxu1 %vm134_vm0, %v108_v14  ;;  %213 = vmatprep.mubr.f32.mxu0 %v3310_v3  ;;  %v2784_v32 = vld [vmem:[%s3319_s0] ss:$16 sps:$4 sm:$0xff]   ;;  %v65_v35 = vld [vmem:[%s3318_s19 + $0x28] sm:$0xff] }
  0x13   :  { %2099 = vmatpush1.msk.msra.mxu1 %vm134_vm0, %v106_v10  ;;  %249 = vmatprep.mubr.f32.mxu1 %v3310_v3  ;;  %v2810_v36 = vld [vmem:[%s3319_s0 + $0x8] ss:$16 sps:$4 sm:$0xff]  }
  0x14   :  { %513 = vmatprep.subr.bf16.mxu0 %v2675_v15  ;;  %554 = vmatprep.subr.bf16.mxu1 %v2682_v16 }
  0x15   :  { %2091 = vmatmul.mubr.msk.f32.gmra.mxu0 %vm109_vm1, %v61_v17  ;;  %2097 = vmatmul.mubr.msk.f32.gmra.mxu1 %vm109_vm1, %v2695_v18 }
  0x16   :  { %219 = vmatprep.mubr.f32.mxu0 %v3310_v3  ;;  %320 = vmatprep.mubr.f32.mxu1 %v3310_v3 }
  0x17   :  { %514 = vmatpush1.bf16.msra.mxu0 %v2702_v19 }
  0x18   :  { %515 = vmatprep.subr.bf16.mxu0 %v2709_v20 }
  0x19   :  { %2092 = vmatmul.mubr.msk.f32.gmra.mxu0 %vm109_vm1, %v62_v21  ;;  %2100 = vmatmul.mubr.msk.f32.vlgmr.msra.gmra.mxu1 %vm109_vm1, %v60_v12 }
  0x1a   :  { %555 = vmatpush1.bf16.msra.mxu1 %v2722_v22  ;;  %225 = vmatprep.mubr.f32.mxu0 %v3310_v3 }
  0x1b   :  { %326 = vmatprep.mubr.f32.mxu1 %v3310_v3  ;;  %516 = vmatpush1.bf16.msra.mxu0 %v2728_v23 }
  0x1c   :  { %517 = vmatprep.subr.bf16.mxu0 %v2734_v24  ;;  %556 = vmatprep.subr.bf16.mxu1 %v2739_v25 }
  0x1d   :  { %2093 = vmatmul.mubr.msk.f32.gmra.mxu0 %vm109_vm1, %v63_v26  ;;  %2101 = vmatmul.mubr.msk.f32.gmra.mxu1 %vm109_vm1, %v61_v17 }
  0x1e   :  { %231 = vmatprep.mubr.f32.mxu0 %v3310_v3  ;;  %332 = vmatprep.mubr.f32.mxu1 %v3310_v3 }
  0x1f   :  { %518 = vmatpush1.bf16.msra.mxu0 %v2753_v27  ;;  %557 = vmatpush1.bf16.msra.mxu1 %v2758_v28 }
  0x20   :  { %519 = vmatprep.subr.bf16.mxu0 %v2765_v29  ;;  %558 = vmatprep.subr.bf16.mxu1 %v2770_v30 }
  0x21   :  { %2094 = vmatmul.mubr.msk.f32.gmra.mxu0 %vm109_vm1, %v64_v31  ;;  %2102 = vmatmul.mubr.msk.f32.gmra.mxu1 %vm109_vm1, %v62_v21 }
  0x22   :  { %237 = vmatprep.mubr.f32.mxu0 %v3310_v3  ;;  %338 = vmatprep.mubr.f32.mxu1 %v3310_v3 }
  0x23   :  { %520 = vmatpush1.bf16.msra.mxu0 %v2784_v32  ;;  %559 = vmatpush1.bf16.msra.mxu1 %v2789_v33 }
  0x24   :  { %560 = vmatprep.subr.bf16.mxu1 %v2796_v34  ;;  %638 = vmatprep.subr.bf16.mxu0 %v2675_v15 }
  0x25   :  { %2095 = vmatmul.mubr.msk.f32.gmra.mxu0 %vm109_vm1, %v65_v35  ;;  %2103 = vmatmul.mubr.msk.f32.gmra.mxu1 %vm109_vm1, %v63_v26 }
  0x26   :  { %344 = vmatprep.mubr.f32.mxu1 %v3310_v3  ;;  %537 = vmatprep.mubr.bf16.mxu0 %v3312_v37 }
  0x27   :  { %561 = vmatpush1.bf16.msra.mxu1 %v2810_v36 }
  0x28   :  { %679 = vmatprep.subr.bf16.mxu1 %v2682_v16 }
  0x29   :  { %2104 = vmatmul.mubr.msk.f32.gmra.mxu1 %vm109_vm1, %v64_v31  ;;  %538 = vmatmul.mubr.bf16.vlgmr.msra.gmra.mxu0 %v3312_v37 }
  0x2a   :  { %350 = vmatprep.mubr.f32.mxu1 %v3310_v3  ;;  %639 = vmatpush1.bf16.msra.mxu0 %v2702_v19 }
  0x2b   :  { %640 = vmatprep.subr.bf16.mxu0 %v2709_v20  ;;  %662 = vmatprep.mubr.bf16.mxu0 %v3312_v37 }
  0x2d   :  { %2105 = vmatmul.mubr.msk.f32.gmra.mxu1 %vm109_vm1, %v65_v35 }
  0x2e   :  { %356 = vmatprep.mubr.f32.mxu1 %v3310_v3  ;;  %641 = vmatpush1.bf16.msra.mxu0 %v2728_v23 }
  0x2f   :  { %642 = vmatprep.subr.bf16.mxu0 %v2734_v24 }
  0x31   :  { %2106 = vmatmul.mubr.msk.f32.gmra.mxu1 %vm109_vm1, %v2668_v13 }
  0x32   :  { %362 = vmatprep.mubr.f32.mxu1 %v3310_v3  ;;  %643 = vmatpush1.bf16.msra.mxu0 %v2753_v27 }
  0x33   :  { %644 = vmatprep.subr.bf16.mxu0 %v2765_v29 }
  0x35   :  { %2107 = vmatmul.mubr.msk.f32.gmra.mxu1 %vm109_vm1, %v2695_v18 }
  0x36   :  { %578 = vmatprep.mubr.bf16.mxu1 %v3312_v37  ;;  %645 = vmatpush1.bf16.msra.mxu0 %v2784_v32 }
  0x37   :  { %763 = vmatprep.subr.bf16.mxu0 %v2675_v15 }
  0x39   :  { %579 = vmatmul.mubr.bf16.vlgmr.msra.gmra.mxu1 %v3312_v37 }
  0x3a   :  { %680 = vmatpush1.bf16.msra.mxu1 %v2722_v22  ;;  %703 = vmatprep.mubr.bf16.mxu1 %v3312_v37 }
  0x3b   :  { %681 = vmatprep.subr.bf16.mxu1 %v2739_v25 }
  0x3e   :  { %682 = vmatpush1.bf16.msra.mxu1 %v2758_v28 }
  0x3f   :  { %683 = vmatprep.subr.bf16.mxu1 %v2770_v30 }
  0x42   :  { %684 = vmatpush1.bf16.msra.mxu1 %v2789_v33 }
  0x43   :  { %685 = vmatprep.subr.bf16.mxu1 %v2796_v34 }
  0x46   :  { %686 = vmatpush1.bf16.msra.mxu1 %v2810_v36 }
  0x47   :  { %804 = vmatprep.subr.bf16.mxu1 %v2682_v16 }
  0xd1   :  { %v2859_v43 = vpop.f32.mrf.mxu0  ;;  %v245_v44 = vpop.f32.mrf.mxu1 }
  0xd2   :  { %v2862_v45 = vadd.f32 %v245_v44, %v2855_v41 }
  0xd3   :  { %v211_v46 = vpop.f32.mrf.mxu0  ;;  %v247_v47 = vpop.f32.mrf.mxu1 }
  0xd4   :  { %v2865_v48 = vadd.f32 %v247_v47, %v2857_v42 }
  0xd5   :  { %v215_v49 = vpop.f32.mrf.mxu0  ;;  %v251_v50 = vpop.f32.mrf.mxu1 }
  0xd6   :  { %3320 = vst [vmem:[#allocation3_spill] sm:$0xff] %v2865_v48  ;;  %v2868_v51 = vadd.f32 %v215_v49, %v2855_v41  ;;  %v2871_v52 = vadd.f32 %v251_v50, %v2855_v41 }
  0xd7   :  { %v217_v53 = vpop.f32.mrf.mxu0  ;;  %v253_v54 = vpop.f32.mrf.mxu1 }
  0xd8   :  { %3321 = vst [vmem:[#allocation4_spill] sm:$0xff] %v2871_v52  ;;  %v2874_v55 = vadd.f32 %v217_v53, %v2857_v42  ;;  %v2877_v56 = vadd.f32 %v253_v54, %v2857_v42 }
  0xd9   :  { %v221_v58 = vpop.f32.mrf.mxu0  ;;  %v322_v59 = vpop.f32.mrf.mxu1 }
  0xda   :  { %3322 = vst [vmem:[#allocation5_spill] sm:$0xff] %v2877_v56  ;;  %v2881_v60 = vadd.f32 %v221_v58, %v2855_v41 }
  0xdb   :  { %v223_v62 = vpop.f32.mrf.mxu0  ;;  %v2884_v63 = vpop.f32.mrf.mxu1 }
  0xdc   :  { %v2887_v1 = vadd.f32 %v223_v62, %v2857_v42 }
  0xdd   :  { %v227_v2 = vpop.f32.mrf.mxu0  ;;  %v328_v4 = vpop.f32.mrf.mxu1 }
  0xde   :  { %v2890_v7 = vadd.f32 %v227_v2, %v2855_v41  ;;  %v2892_v8 = vadd.f32 %v328_v4, %v82_v0 }
  0xdf   :  { %v229_v9 = vpop.f32.mrf.mxu0  ;;  %v330_v10 = vpop.f32.mrf.mxu1 }
  0xe0   :  { %v2895_v11 = vadd.f32 %v229_v9, %v2857_v42  ;;  %v2897_v5 = vadd.f32 %v330_v10, %v86_v6 }
  0xe1   :  { %v233_v12 = vpop.f32.mrf.mxu0  ;;  %v334_v13 = vpop.f32.mrf.mxu1 }
  0xe2   :  { %v2900_v14 = vadd.f32 %v233_v12, %v2855_v41  ;;  %v2902_v17 = vadd.f32 %v334_v13, %v82_v0 }
  0xe3   :  { %v235_v18 = vpop.f32.mrf.mxu0  ;;  %v336_v21 = vpop.f32.mrf.mxu1 }
  0xe4   :  { %v2905_v26 = vadd.f32 %v235_v18, %v2857_v42  ;;  %v2907_v31 = vadd.f32 %v336_v21, %v86_v6 }
  0xe5   :  { %v239_v35 = vpop.f32.mrf.mxu0  ;;  %v340_v38 = vpop.f32.mrf.mxu1 }
  0xe6   :  { %v2910_v39 = vadd.f32 %v239_v35, %v2855_v41  ;;  %v2912_v40 = vadd.f32 %v340_v38, %v82_v0  ;;  %v212_v35 = vadd.f32 %v211_v46, %v2857_v42 }
  0xe7   :  { %v241_v44 = vpop.f32.mrf.mxu0  ;;  %v342_v47 = vpop.f32.mrf.mxu1 }
  0xe8   :  { %v2915_v49 = vadd.f32 %v241_v44, %v2857_v42  ;;  %v2917_v50 = vadd.f32 %v342_v47, %v86_v6  ;;  %v210_v44 = vadd.f32 %v2859_v43, %v2855_v41  ;;  %v325_v43 = vadd.f32 %v2884_v63, %v86_v6 }
  0xe9   :  { %v346_v53 = vpop.f32.mrf.mxu1  ;;  %v539_v54 = vpop.f32.mrf.mxu0 }
  0xea   :  { %v2919_v57 = vadd.f32 %v346_v53, %v82_v0 }
  0xeb   :  { %v348_v58 = vpop.f32.mrf.mxu1  ;;  %v541_v61 = vpop.f32.mrf.mxu0 }
  0xec   :  { %v2921_v62 = vadd.f32 %v348_v58, %v86_v6  ;;  %v588_v53 = vadd.f32 %v541_v61, %v212_v35 }
  0xed   :  { %v352_v2 = vpop.f32.mrf.mxu1  ;;  %v543_v4 = vpop.f32.mrf.mxu0 }
  0xee   :  { %v2923_v9 = vadd.f32 %v352_v2, %v82_v0  ;;  %v587_v4 = vadd.f32 %v539_v54, %v210_v44  ;;  %v2125_v37 = vmul.f32 -1.442695, %v588_v53 }
  0xef   :  { %v354_v10 = vpop.f32.mrf.mxu1  ;;  %v544_v12 = vpop.f32.mrf.mxu0 }
  0xf0   :  { %v2925_v13 = vadd.f32 %v354_v10, %v86_v6  ;;  %v323_v12 = vadd.f32 %v322_v59, %v82_v0  ;;  %v2124_v56 = vmul.f32 -1.442695, %v587_v4  ;;  %2397 = vpow2.f32 %v2125_v37 }
  0xf1   :  { %v358_v18 = vpop.f32.mrf.mxu1 }
  0xf2   :  { %v2927_v21 = vadd.f32 %v358_v18, %v82_v0  ;;  %2399 = vpow2.f32 %v2124_v56 }
  0xf3   :  { %v360_v38 = vpop.f32.mrf.mxu1 }
  0xf4   :  { %v2932_v47 = vadd.f32 %v360_v38, %v86_v6 }
  0xf5   :  { %v364_v58 = vpop.f32.mrf.mxu1 }
  0xf6   :  { %v2934_v2 = vadd.f32 %v364_v58, %v82_v0 }
  0xf7   :  { %v366_v3 = vpop.f32.mrf.mxu1 }
  0xf8   :  { %v2936_v10 = vadd.f32 %v366_v3, %v86_v6 }
  0xf9   :  { %v580_v18 = vpop.f32.mrf.mxu1 }
  0xfa   :  { %v589_v52 = vadd.f32 %v580_v18, %v323_v12 }
  0xfb   :  { %v582_v42 = vpop.f32.mrf.mxu1 }
  0xfc   :  { %v2126_v46 = vmul.f32 -1.442695, %v589_v52  ;;  %v590_v54 = vadd.f32 %v582_v42, %v325_v43  ;;  %v3323_v43 = vmov 0  }
  0xfd   :  { %v584_v48 = vpop.f32.mrf.mxu1  ;;  %v2398_v61 = vpop.eup %2397 }
  0xfe   :  { %2401 = vpow2.f32 %v2126_v46  ;;  %v2127_v59 = vmul.f32 -1.442695, %v590_v54  ;;  %v604_v3 = vadd.f32 1.0, %v2398_v61 }
  0xff   :  { %v585_v41 = vpop.f32.mrf.mxu1  ;;  %v2400_v35 = vpop.eup %2399 }
 0x100   :  { %v603_v44 = vadd.f32 1.0, %v2400_v35 }
 0x10b   :  { %v2402_v38 = vpop.eup %2401 }
 0x10c   :  { %v605_v0 = vadd.f32 1.0, %v2402_v38 }
 0x10e   :  { %2403 = vrcp.f32 %v605_v0 }
 0x10f   :  { %2405 = vpow2.f32 %v2127_v59 }
 0x110   :  { %2407 = vrcp.f32 %v604_v3 }
 0x111   :  { %2409 = vrcp.f32 %v603_v44 }
 0x11b   :  { %v2404_v52 = vpop.eup %2403 }
 0x11c   :  { %v2406_v37 = vpop.eup %2405  ;;  %v615_v48 = vmul.f32 2.0, %v2404_v52 }
 0x11d   :  { %v2408_v56 = vpop.eup %2407  ;;  %v606_v4 = vadd.f32 1.0, %v2406_v37 }
 0x11e   :  { %v2128_v53 = vadd.f32 -1.0, %v615_v48  ;;  %v2410_v58 = vpop.eup %2409  ;;  %v617_v63 = vmul.f32 0.0, %v2408_v56 }
 0x11f   :  { %2411 = vrcp.f32 %v606_v4 }
 0x120   :  { %v618_v6 = vmul.f32 %v2410_v58, %v2128_v53 }
 0x122   :  { %v2939_v12 = vadd.f32 %v618_v6, %v617_v63 }
 0x124   :  { %2413 = vtanh.f32 %v2939_v12 }
 0x12c   :  { %v2412_v18 = vpop.eup %2411 }
 0x131   :  { %v2414_v42 = vpop.eup %2413 }
 0x132   :  { %v621_v46 = vmul.f32 %v2414_v42, %v2412_v18 }
 0x134   :  { %v626_v41 = vpack.c.bf16 %v621_v46, %v621_v46 }
 0x136   :  { %2129 = vmatmul.mubr.msk.bf16.vlgmr.msra.gmra.mxu0 %vm501_vm2, %v626_v41  ;;  %2130 = vmatmul.mubr.msk.bf16.vlgmr.msra.gmra.mxu1 %vm501_vm2, %v626_v41 }
 0x137   :  { %764 = vmatpush1.bf16.msra.mxu0 %v2702_v19  ;;  %805 = vmatpush1.bf16.msra.mxu1 %v2722_v22 }
 0x138   :  { %765 = vmatprep.subr.bf16.mxu0 %v2709_v20  ;;  %806 = vmatprep.subr.bf16.mxu1 %v2739_v25 }
 0x139   :  { %787 = vmatprep.mubr.bf16.mxu0 %v3323_v43  ;;  %828 = vmatprep.mubr.bf16.mxu1 %v3323_v43 }
 0x13b   :  { %766 = vmatpush1.bf16.msra.mxu0 %v2728_v23  ;;  %807 = vmatpush1.bf16.msra.mxu1 %v2758_v28 }
 0x13c   :  { %767 = vmatprep.subr.bf16.mxu0 %v2734_v24  ;;  %808 = vmatprep.subr.bf16.mxu1 %v2770_v30 }
 0x13f   :  { %768 = vmatpush1.bf16.msra.mxu0 %v2753_v27  ;;  %809 = vmatpush1.bf16.msra.mxu1 %v2789_v33 }
 0x140   :  { %769 = vmatprep.subr.bf16.mxu0 %v2765_v29  ;;  %810 = vmatprep.subr.bf16.mxu1 %v2796_v34 }
 0x143   :  { %770 = vmatpush1.bf16.msra.mxu0 %v2784_v32  ;;  %811 = vmatpush1.bf16.msra.mxu1 %v2810_v36 }
 0x144   :  { %888 = vmatprep.subr.bf16.mxu0 %v2675_v15  ;;  %929 = vmatprep.subr.bf16.mxu1 %v2682_v16 }
 0x1f6   :  { %v664_v54 = vpop.f32.mrf.mxu0  ;;  %v705_v61 = vpop.f32.mrf.mxu1 }
 0x1f7   :  { %v712_v35 = vadd.f32 %v664_v54, %v2868_v51  ;;  %v714_v38 = vadd.f32 %v705_v61, %v2892_v8 }
 0x1f8   :  { %v666_v59 = vpop.f32.mrf.mxu0  ;;  %v707_v3 = vpop.f32.mrf.mxu1 }
 0x1f9   :  { %v2131_v0 = vmul.f32 -1.442695, %v712_v35  ;;  %v2133_v44 = vmul.f32 -1.442695, %v714_v38  ;;  %v713_v52 = vadd.f32 %v666_v59, %v2874_v55  ;;  %v715_v4 = vadd.f32 %v707_v3, %v2897_v5 }
 0x1fa   :  { %v668_v37 = vpop.f32.mrf.mxu0  ;;  %v709_v48 = vpop.f32.mrf.mxu1 }
 0x1fb   :  { %2415 = vpow2.f32 %v2131_v0  ;;  %v2132_v56 = vmul.f32 -1.442695, %v713_v52  ;;  %v2134_v6 = vmul.f32 -1.442695, %v715_v4 }
 0x1fc   :  { %2417 = vpow2.f32 %v2133_v44  ;;  %v669_v53 = vpop.f32.mrf.mxu0  ;;  %v710_v58 = vpop.f32.mrf.mxu1 }
 0x1fd   :  { %2419 = vpow2.f32 %v2132_v56 }
 0x208   :  { %v2416_v63 = vpop.eup %2415 }
 0x209   :  { %v2418_v51 = vpop.eup %2417  ;;  %v728_v46 = vadd.f32 1.0, %v2416_v63 }
 0x20a   :  { %v2420_v8 = vpop.eup %2419  ;;  %v730_v18 = vadd.f32 1.0, %v2418_v51 }
 0x20b   :  { %v729_v42 = vadd.f32 1.0, %v2420_v8 }
 0x20c   :  { %2421 = vrcp.f32 %v730_v18 }
 0x20d   :  { %2423 = vpow2.f32 %v2134_v6 }
 0x20e   :  { %2425 = vrcp.f32 %v729_v42 }
 0x20f   :  { %2427 = vrcp.f32 %v728_v46 }
 0x219   :  { %v2422_v55 = vpop.eup %2421 }
 0x21a   :  { %v2424_v41 = vpop.eup %2423  ;;  %v740_v54 = vmul.f32 2.0, %v2422_v55 }
 0x21b   :  { %v2426_v61 = vpop.eup %2425  ;;  %v731_v59 = vadd.f32 1.0, %v2424_v41 }
 0x21c   :  { %v2135_v35 = vadd.f32 -1.0, %v740_v54  ;;  %v2428_v38 = vpop.eup %2427  ;;  %v742_v5 = vmul.f32 %v2426_v61, %v2939_v12 }
 0x21d   :  { %2429 = vrcp.f32 %v731_v59 }
 0x21e   :  { %v743_v0 = vmul.f32 %v2428_v38, %v2135_v35 }
 0x220   :  { %v2967_v3 = vadd.f32 %v743_v0, %v742_v5 }
 0x222   :  { %2431 = vtanh.f32 %v2967_v3 }
 0x22a   :  { %v2430_v44 = vpop.eup %2429 }
 0x22f   :  { %v2432_v52 = vpop.eup %2431 }
 0x230   :  { %v746_v37 = vmul.f32 %v2432_v52, %v2430_v44 }
 0x232   :  { %v751_v48 = vpack.c.bf16 %v746_v37, %v746_v37 }
 0x234   :  { %2136 = vmatmul.mubr.msk.bf16.vlgmr.msra.gmra.mxu0 %vm501_vm2, %v751_v48  ;;  %2137 = vmatmul.mubr.msk.bf16.vlgmr.msra.gmra.mxu1 %vm501_vm2, %v751_v48 }
 0x235   :  { %889 = vmatpush1.bf16.msra.mxu0 %v2702_v19  ;;  %930 = vmatpush1.bf16.msra.mxu1 %v2722_v22 }
 0x236   :  { %890 = vmatprep.subr.bf16.mxu0 %v2709_v20  ;;  %931 = vmatprep.subr.bf16.mxu1 %v2739_v25 }
 0x237   :  { %912 = vmatprep.mubr.bf16.mxu0 %v3323_v43  ;;  %953 = vmatprep.mubr.bf16.mxu1 %v3323_v43 }
 0x239   :  { %891 = vmatpush1.bf16.msra.mxu0 %v2728_v23  ;;  %932 = vmatpush1.bf16.msra.mxu1 %v2758_v28 }
 0x23a   :  { %892 = vmatprep.subr.bf16.mxu0 %v2734_v24  ;;  %933 = vmatprep.subr.bf16.mxu1 %v2770_v30 }
 0x23d   :  { %893 = vmatpush1.bf16.msra.mxu0 %v2753_v27  ;;  %934 = vmatpush1.bf16.msra.mxu1 %v2789_v33 }
 0x23e   :  { %894 = vmatprep.subr.bf16.mxu0 %v2765_v29  ;;  %935 = vmatprep.subr.bf16.mxu1 %v2796_v34 }
 0x241   :  { %895 = vmatpush1.bf16.msra.mxu0 %v2784_v32  ;;  %936 = vmatpush1.bf16.msra.mxu1 %v2810_v36 }
 0x242   :  { %1013 = vmatprep.subr.bf16.mxu0 %v2675_v15  ;;  %1054 = vmatprep.subr.bf16.mxu1 %v2682_v16 }
 0x2f4   :  { %v789_v12 = vpop.f32.mrf.mxu0  ;;  %v830_v56 = vpop.f32.mrf.mxu1 }
 0x2f5   :  { %v837_v53 = vadd.f32 %v789_v12, %v2881_v60  ;;  %v839_v58 = vadd.f32 %v830_v56, %v2902_v17 }
 0x2f6   :  { %v791_v4 = vpop.f32.mrf.mxu0  ;;  %v832_v63 = vpop.f32.mrf.mxu1 }
 0x2f7   :  { %v2138_v51 = vmul.f32 -1.442695, %v837_v53  ;;  %v2140_v6 = vmul.f32 -1.442695, %v839_v58  ;;  %v838_v8 = vadd.f32 %v791_v4, %v2887_v1  ;;  %v840_v54 = vadd.f32 %v832_v63, %v2907_v31 }
 0x2f8   :  { %v793_v18 = vpop.f32.mrf.mxu0  ;;  %v834_v42 = vpop.f32.mrf.mxu1 }
 0x2f9   :  { %2433 = vpow2.f32 %v2138_v51  ;;  %v2139_v46 = vmul.f32 -1.442695, %v838_v8  ;;  %v2141_v35 = vmul.f32 -1.442695, %v840_v54 }
 0x2fa   :  { %2435 = vpow2.f32 %v2140_v6  ;;  %v794_v55 = vpop.f32.mrf.mxu0  ;;  %v835_v41 = vpop.f32.mrf.mxu1 }
 0x2fb   :  { %2437 = vpow2.f32 %v2139_v46 }
 0x306   :  { %v2434_v61 = vpop.eup %2433 }
 0x307   :  { %v2436_v60 = vpop.eup %2435  ;;  %v853_v0 = vadd.f32 1.0, %v2434_v61 }
 0x308   :  { %v2438_v17 = vpop.eup %2437  ;;  %v855_v38 = vadd.f32 1.0, %v2436_v60 }
 0x309   :  { %v854_v59 = vadd.f32 1.0, %v2438_v17 }
 0x30a   :  { %2439 = vrcp.f32 %v855_v38 }
 0x30b   :  { %2441 = vpow2.f32 %v2141_v35 }
 0x30c   :  { %2443 = vrcp.f32 %v854_v59 }
 0x30d   :  { %2445 = vrcp.f32 %v853_v0 }
 0x317   :  { %v2440_v1 = vpop.eup %2439 }
 0x318   :  { %v2442_v5 = vpop.eup %2441  ;;  %v865_v44 = vmul.f32 2.0, %v2440_v1 }
 0x319   :  { %v2444_v52 = vpop.eup %2443  ;;  %v856_v12 = vadd.f32 1.0, %v2442_v5 }
 0x31a   :  { %v2142_v37 = vadd.f32 -1.0, %v865_v44  ;;  %v2446_v48 = vpop.eup %2445  ;;  %v867_v31 = vmul.f32 %v2444_v52, %v2967_v3 }
 0x31b   :  { %2447 = vrcp.f32 %v856_v12 }
 0x31c   :  { %v868_v56 = vmul.f32 %v2446_v48, %v2142_v37 }
 0x31e   :  { %v2995_v53 = vadd.f32 %v868_v56, %v867_v31 }
 0x320   :  { %2449 = vtanh.f32 %v2995_v53 }
 0x328   :  { %v2448_v58 = vpop.eup %2447 }
 0x32d   :  { %v2450_v4 = vpop.eup %2449 }
 0x32e   :  { %v871_v63 = vmul.f32 %v2450_v4, %v2448_v58 }
 0x330   :  { %v876_v51 = vpack.c.bf16 %v871_v63, %v871_v63 }
 0x332   :  { %2143 = vmatmul.mubr.msk.bf16.vlgmr.msra.gmra.mxu0 %vm501_vm2, %v876_v51  ;;  %2144 = vmatmul.mubr.msk.bf16.vlgmr.msra.gmra.mxu1 %vm501_vm2, %v876_v51 }
 0x333   :  { %1014 = vmatpush1.bf16.msra.mxu0 %v2702_v19  ;;  %1055 = vmatpush1.bf16.msra.mxu1 %v2722_v22 }
 0x334   :  { %1015 = vmatprep.subr.bf16.mxu0 %v2709_v20  ;;  %1056 = vmatprep.subr.bf16.mxu1 %v2739_v25 }
 0x335   :  { %1037 = vmatprep.mubr.bf16.mxu0 %v3323_v43  ;;  %1078 = vmatprep.mubr.bf16.mxu1 %v3323_v43 }
 0x337   :  { %1016 = vmatpush1.bf16.msra.mxu0 %v2728_v23  ;;  %1057 = vmatpush1.bf16.msra.mxu1 %v2758_v28 }
 0x338   :  { %1017 = vmatprep.subr.bf16.mxu0 %v2734_v24  ;;  %1058 = vmatprep.subr.bf16.mxu1 %v2770_v30 }
 0x33b   :  { %1018 = vmatpush1.bf16.msra.mxu0 %v2753_v27  ;;  %1059 = vmatpush1.bf16.msra.mxu1 %v2789_v33 }
 0x33c   :  { %1019 = vmatprep.subr.bf16.mxu0 %v2765_v29  ;;  %1060 = vmatprep.subr.bf16.mxu1 %v2796_v34 }
 0x33f   :  { %1020 = vmatpush1.bf16.msra.mxu0 %v2784_v32  ;;  %1061 = vmatpush1.bf16.msra.mxu1 %v2810_v36 }
 0x340   :  { %1138 = vmatprep.subr.bf16.mxu0 %v2675_v15  ;;  %1179 = vmatprep.subr.bf16.mxu1 %v2682_v16 }
 0x3f2   :  { %v914_v3 = vpop.f32.mrf.mxu0  ;;  %v955_v6 = vpop.f32.mrf.mxu1 }
 0x3f3   :  { %v962_v8 = vadd.f32 %v914_v3, %v2890_v7  ;;  %v964_v18 = vadd.f32 %v955_v6, %v2912_v40 }
 0x3f4   :  { %v916_v42 = vpop.f32.mrf.mxu0  ;;  %v957_v46 = vpop.f32.mrf.mxu1 }
 0x3f5   :  { %v2145_v55 = vmul.f32 -1.442695, %v962_v8  ;;  %v2147_v41 = vmul.f32 -1.442695, %v964_v18  ;;  %v963_v54 = vadd.f32 %v916_v42, %v2895_v11  ;;  %v965_v59 = vadd.f32 %v957_v46, %v2917_v50 }
 0x3f6   :  { %v918_v61 = vpop.f32.mrf.mxu0  ;;  %v959_v60 = vpop.f32.mrf.mxu1 }
 0x3f7   :  { %2451 = vpow2.f32 %v2145_v55  ;;  %v2146_v35 = vmul.f32 -1.442695, %v963_v54  ;;  %v2148_v1 = vmul.f32 -1.442695, %v965_v59 }
 0x3f8   :  { %2453 = vpow2.f32 %v2147_v41  ;;  %v919_v17 = vpop.f32.mrf.mxu0  ;;  %v960_v38 = vpop.f32.mrf.mxu1 }
 0x3f9   :  { %2455 = vpow2.f32 %v2146_v35 }
 0x404   :  { %v2452_v0 = vpop.eup %2451 }
 0x405   :  { %v2454_v7 = vpop.eup %2453  ;;  %v978_v52 = vadd.f32 1.0, %v2452_v0 }
 0x406   :  { %v2456_v40 = vpop.eup %2455  ;;  %v980_v5 = vadd.f32 1.0, %v2454_v7 }
 0x407   :  { %v979_v44 = vadd.f32 1.0, %v2456_v40 }
 0x408   :  { %2457 = vrcp.f32 %v980_v5 }
 0x409   :  { %2459 = vpow2.f32 %v2148_v1 }
 0x40a   :  { %2461 = vrcp.f32 %v979_v44 }
 0x40b   :  { %2463 = vrcp.f32 %v978_v52 }
 0x415   :  { %v2458_v11 = vpop.eup %2457 }
 0x416   :  { %v2460_v37 = vpop.eup %2459  ;;  %v990_v48 = vmul.f32 2.0, %v2458_v11 }
 0x417   :  { %v2462_v12 = vpop.eup %2461  ;;  %v981_v58 = vadd.f32 1.0, %v2460_v37 }
 0x418   :  { %v2149_v56 = vadd.f32 -1.0, %v990_v48  ;;  %v2464_v31 = vpop.eup %2463  ;;  %v992_v50 = vmul.f32 %v2462_v12, %v2995_v53 }
 0x419   :  { %2465 = vrcp.f32 %v981_v58 }
 0x41a   :  { %v993_v4 = vmul.f32 %v2464_v31, %v2149_v56 }
 0x41c   :  { %v3023_v63 = vadd.f32 %v993_v4, %v992_v50 }
 0x41e   :  { %2467 = vtanh.f32 %v3023_v63 }
 0x426   :  { %v2466_v51 = vpop.eup %2465 }
 0x42b   :  { %v2468_v3 = vpop.eup %2467 }
 0x42c   :  { %v996_v6 = vmul.f32 %v2468_v3, %v2466_v51 }
 0x42e   :  { %v1001_v8 = vpack.c.bf16 %v996_v6, %v996_v6 }
 0x430   :  { %2150 = vmatmul.mubr.msk.bf16.vlgmr.msra.gmra.mxu0 %vm501_vm2, %v1001_v8  ;;  %2151 = vmatmul.mubr.msk.bf16.vlgmr.msra.gmra.mxu1 %vm501_vm2, %v1001_v8 }
 0x431   :  { %1139 = vmatpush1.bf16.msra.mxu0 %v2702_v19  ;;  %1180 = vmatpush1.bf16.msra.mxu1 %v2722_v22 }
 0x432   :  { %1140 = vmatprep.subr.bf16.mxu0 %v2709_v20  ;;  %1181 = vmatprep.subr.bf16.mxu1 %v2739_v25 }
 0x433   :  { %1162 = vmatprep.mubr.bf16.mxu0 %v3323_v43  ;;  %1203 = vmatprep.mubr.bf16.mxu1 %v3323_v43 }
 0x435   :  { %1141 = vmatpush1.bf16.msra.mxu0 %v2728_v23  ;;  %1182 = vmatpush1.bf16.msra.mxu1 %v2758_v28 }
 0x436   :  { %1142 = vmatprep.subr.bf16.mxu0 %v2734_v24  ;;  %1183 = vmatprep.subr.bf16.mxu1 %v2770_v30 }
 0x439   :  { %1143 = vmatpush1.bf16.msra.mxu0 %v2753_v27  ;;  %1184 = vmatpush1.bf16.msra.mxu1 %v2789_v33 }
 0x43a   :  { %1144 = vmatprep.subr.bf16.mxu0 %v2765_v29  ;;  %1185 = vmatprep.subr.bf16.mxu1 %v2796_v34 }
 0x43d   :  { %1145 = vmatpush1.bf16.msra.mxu0 %v2784_v32  ;;  %1186 = vmatpush1.bf16.msra.mxu1 %v2810_v36 }
 0x43e   :  { %1263 = vmatprep.subr.bf16.mxu0 %v2675_v15  ;;  %1304 = vmatprep.subr.bf16.mxu1 %v2682_v16 }
 0x4f0   :  { %v1039_v53 = vpop.f32.mrf.mxu0  ;;  %v1080_v18 = vpop.f32.mrf.mxu1 }
 0x4f1   :  { %v1087_v42 = vadd.f32 %v1039_v53, %v2900_v14  ;;  %v1089_v46 = vadd.f32 %v1080_v18, %v2919_v57 }
 0x4f2   :  { %v1041_v55 = vpop.f32.mrf.mxu0  ;;  %v1082_v41 = vpop.f32.mrf.mxu1 }
 0x4f3   :  { %v2152_v54 = vmul.f32 -1.442695, %v1087_v42  ;;  %v2154_v61 = vmul.f32 -1.442695, %v1089_v46  ;;  %v1088_v60 = vadd.f32 %v1041_v55, %v2905_v26  ;;  %v1090_v7 = vadd.f32 %v1082_v41, %v2921_v62 }
 0x4f4   :  { %v1043_v35 = vpop.f32.mrf.mxu0  ;;  %v1084_v17 = vpop.f32.mrf.mxu1 }
 0x4f5   :  { %2469 = vpow2.f32 %v2152_v54  ;;  %v2153_v38 = vmul.f32 -1.442695, %v1088_v60  ;;  %v2155_v40 = vmul.f32 -1.442695, %v1090_v7 }
 0x4f6   :  { %2471 = vpow2.f32 %v2154_v61  ;;  %v1044_v59 = vpop.f32.mrf.mxu0  ;;  %v1085_v0 = vpop.f32.mrf.mxu1 }
 0x4f7   :  { %2473 = vpow2.f32 %v2153_v38 }
 0x502   :  { %v2470_v1 = vpop.eup %2469 }
 0x503   :  { %v2472_v14 = vpop.eup %2471  ;;  %v1103_v52 = vadd.f32 1.0, %v2470_v1 }
 0x504   :  { %v2474_v57 = vpop.eup %2473  ;;  %v1105_v5 = vadd.f32 1.0, %v2472_v14 }
 0x505   :  { %v1104_v44 = vadd.f32 1.0, %v2474_v57  ;;  %v2545_v57 = vld [vmem:[%s3319_s0 + $0x60] ss:$16 sps:$4 sm:$0xff]  }
 0x506   :  { %2475 = vrcp.f32 %v1105_v5  ;;  %v2546_v5 = vld [vmem:[%s3319_s0 + $0x68] ss:$16 sps:$4 sm:$0xff]  }
 0x507   :  { %2477 = vpow2.f32 %v2155_v40 }
 0x508   :  { %2479 = vrcp.f32 %v1104_v44  ;;  %v2547_v44 = vld [vmem:[%s3319_s0 + $0x44] ss:$16 sps:$4 sm:$0xff]  }
 0x509   :  { %2481 = vrcp.f32 %v1103_v52  ;;  %v2548_v52 = vld [vmem:[%s3319_s0 + $0x4c] ss:$16 sps:$4 sm:$0xff]  }
 0x513   :  { %v2476_v26 = vpop.eup %2475 }
 0x514   :  { %v2478_v11 = vpop.eup %2477  ;;  %v1115_v37 = vmul.f32 2.0, %v2476_v26  ;;  %v2549_v26 = vld [vmem:[%s3319_s0 + $0x40] ss:$16 sps:$4 sm:$0xff]  }
 0x515   :  { %v2480_v48 = vpop.eup %2479  ;;  %v1106_v31 = vadd.f32 1.0, %v2478_v11  ;;  %v2550_v11 = vld [vmem:[%s3319_s0 + $0x48] ss:$16 sps:$4 sm:$0xff]  }
 0x516   :  { %v2156_v12 = vadd.f32 -1.0, %v1115_v37  ;;  %v2482_v56 = vpop.eup %2481  ;;  %v1117_v62 = vmul.f32 %v2480_v48, %v3023_v63  ;;  %v2551_v37 = vld [vmem:[%s3319_s0 + $0x24] ss:$16 sps:$4 sm:$0xff]   ;;  %v2552_v48 = vld [vmem:[%s3319_s0 + $0x2c] ss:$16 sps:$4 sm:$0xff]  }
 0x517   :  { %2483 = vrcp.f32 %v1106_v31 }
 0x518   :  { %v1118_v58 = vmul.f32 %v2482_v56, %v2156_v12  ;;  %v2554_v12 = vld [vmem:[%s3319_s0 + $0x4] ss:$16 sps:$4 sm:$0xff]   ;;  %v3324_v56 = vmov 0.0  }
 0x51a   :  { %v3051_v4 = vadd.f32 %v1118_v58, %v1117_v62 }
 0x51c   :  { %2485 = vtanh.f32 %v3051_v4 }
 0x524   :  { %v2484_v50 = vpop.eup %2483 }
 0x529   :  { %v2486_v51 = vpop.eup %2485 }
 0x52a   :  { %v1121_v3 = vmul.f32 %v2486_v51, %v2484_v50 }
 0x52c   :  { %v1126_v6 = vpack.c.bf16 %v1121_v3, %v1121_v3 }
 0x52e   :  { %2157 = vmatmul.mubr.msk.bf16.vlgmr.msra.gmra.mxu0 %vm501_vm2, %v1126_v6  ;;  %2158 = vmatmul.mubr.msk.bf16.vlgmr.msra.gmra.mxu1 %vm501_vm2, %v1126_v6  ;;  %v3325_v6 = vld [vmem:[#allocation3_spill] sm:$0xff] }
 0x52f   :  { %1264 = vmatpush1.bf16.msra.mxu0 %v2702_v19  ;;  %1305 = vmatpush1.bf16.msra.mxu1 %v2722_v22 }
 0x530   :  { %1265 = vmatprep.subr.bf16.mxu0 %v2709_v20  ;;  %1306 = vmatprep.subr.bf16.mxu1 %v2739_v25 }
 0x531   :  { %1287 = vmatprep.mubr.bf16.mxu0 %v3323_v43  ;;  %1328 = vmatprep.mubr.bf16.mxu1 %v3323_v43 }
 0x533   :  { %1266 = vmatpush1.bf16.msra.mxu0 %v2728_v23  ;;  %1307 = vmatpush1.bf16.msra.mxu1 %v2758_v28 }
 0x534   :  { %1267 = vmatprep.subr.bf16.mxu0 %v2734_v24  ;;  %1308 = vmatprep.subr.bf16.mxu1 %v2770_v30 }
 0x537   :  { %1268 = vmatpush1.bf16.msra.mxu0 %v2753_v27  ;;  %1309 = vmatpush1.bf16.msra.mxu1 %v2789_v33 }
 0x538   :  { %1269 = vmatprep.subr.bf16.mxu0 %v2765_v29  ;;  %1310 = vmatprep.subr.bf16.mxu1 %v2796_v34 }
 0x53b   :  { %1270 = vmatpush1.bf16.msra.mxu0 %v2784_v32  ;;  %1311 = vmatpush1.bf16.msra.mxu1 %v2810_v36 }
 0x53c   :  { %1388 = vmatprep.subr.bf16.mxu0 %v2675_v15  ;;  %1429 = vmatprep.subr.bf16.mxu1 %v2682_v16 }
 0x5ee   :  { %v1164_v19 = vpop.f32.mrf.mxu0  ;;  %v1205_v20 = vpop.f32.mrf.mxu1 }
 0x5ef   :  { %v1212_v22 = vadd.f32 %v1164_v19, %v2910_v39  ;;  %v1214_v23 = vadd.f32 %v1205_v20, %v2923_v9 }
 0x5f0   :  { %v1166_v24 = vpop.f32.mrf.mxu0  ;;  %v1207_v25 = vpop.f32.mrf.mxu1 }
 0x5f1   :  { %v2159_v27 = vmul.f32 -1.442695, %v1212_v22  ;;  %v2161_v28 = vmul.f32 -1.442695, %v1214_v23  ;;  %v1213_v29 = vadd.f32 %v1166_v24, %v2915_v49  ;;  %v1215_v16 = vadd.f32 %v1207_v25, %v2925_v13 }
 0x5f2   :  { %v1168_v30 = vpop.f32.mrf.mxu0  ;;  %v1209_v63 = vpop.f32.mrf.mxu1 }
 0x5f3   :  { %2487 = vpow2.f32 %v2159_v27  ;;  %v2160_v8 = vmul.f32 -1.442695, %v1213_v29  ;;  %v2162_v42 = vmul.f32 -1.442695, %v1215_v16 }
 0x5f4   :  { %2489 = vpow2.f32 %v2161_v28  ;;  %v1169_v15 = vpop.f32.mrf.mxu0  ;;  %v1210_v53 = vpop.f32.mrf.mxu1 }
 0x5f5   :  { %2491 = vpow2.f32 %v2160_v8 }
 0x600   :  { %v2488_v18 = vpop.eup %2487 }
 0x601   :  { %v2490_v39 = vpop.eup %2489  ;;  %v1228_v41 = vadd.f32 1.0, %v2488_v18 }
 0x602   :  { %v2492_v9 = vpop.eup %2491  ;;  %v1230_v46 = vadd.f32 1.0, %v2490_v39 }
 0x603   :  { %v1229_v55 = vadd.f32 1.0, %v2492_v9 }
 0x604   :  { %2493 = vrcp.f32 %v1230_v46  ;;  %v2369_v46 = vld [vmem:[%s3293_s7 + $0x8] ss:$0 sps:$4 sm:$0xff]  }
 0x605   :  { %2495 = vpow2.f32 %v2162_v42 }
 0x606   :  { %2497 = vrcp.f32 %v1229_v55 }
 0x607   :  { %2499 = vrcp.f32 %v1228_v41 }
 0x611   :  { %v2494_v49 = vpop.eup %2493 }
 0x612   :  { %v2496_v54 = vpop.eup %2495  ;;  %v1240_v61 = vmul.f32 2.0, %v2494_v49 }
 0x613   :  { %v2498_v60 = vpop.eup %2497  ;;  %v1231_v38 = vadd.f32 1.0, %v2496_v54  ;;  %v1608_v54 = vsel %vm1606_vm3, %v2369_v46, 0 }
 0x614   :  { %v2163_v35 = vadd.f32 -1.0, %v1240_v61  ;;  %v2500_v17 = vpop.eup %2499  ;;  %v1242_v13 = vmul.f32 %v2498_v60, %v3051_v4  ;;  %v2370_v61 = vld [vmem:[%s3293_s7] sm:$0xff]  }
 0x615   :  { %2501 = vrcp.f32 %v1231_v38  ;;  %v1581_v60 = vld [vmem:[%s3295_s1] sm:$0xff]  ;;  %v2372_v38 = vld [vmem:[%s3294_s9 + $0x30] sm:$0xff]  }
 0x616   :  { %v1243_v59 = vmul.f32 %v2500_v17, %v2163_v35  ;;  %v1585_v35 = vpack.c.bf16 %v1581_v60, %v1581_v60  ;;  %v2371_v17 = vld [vmem:[%s3294_s9 + $0x38] sm:$0xff]   ;;  %v2386_v60 = vld [vmem:[%s3297_s11] sm:$0xff]  }
 0x618   :  { %v3079_v0 = vadd.f32 %v1243_v59, %v1242_v13  ;;  %v2373_v59 = vld [vmem:[%s3294_s9 + $0x28] sm:$0xff]   ;;  %v2374_v13 = vld [vmem:[%s3294_s9 + $0x20] sm:$0xff]  }
 0x61a   :  { %2503 = vtanh.f32 %v3079_v0 }
 0x622   :  { %v2502_v7 = vpop.eup %2501 }
 0x627   :  { %v2504_v1 = vpop.eup %2503 }
 0x628   :  { %v1246_v14 = vmul.f32 %v2504_v1, %v2502_v7  ;;  %v2376_v7 = vld [vmem:[%s3294_s9 + $0x10] sm:$0xff]   ;;  %v2377_v1 = vld [vmem:[%s3294_s9 + $0x8] sm:$0xff]  }
 0x62a   :  { %v1251_v40 = vpack.c.bf16 %v1246_v14, %v1246_v14  ;;  %v2378_v14 = vld [vmem:[%s3294_s9] sm:$0xff]  }
 0x62c   :  { %2164 = vmatmul.mubr.msk.bf16.vlgmr.msra.gmra.mxu0 %vm501_vm2, %v1251_v40  ;;  %2165 = vmatmul.mubr.msk.bf16.vlgmr.msra.gmra.mxu1 %vm501_vm2, %v1251_v40  ;;  %v2379_v40 = vld [vmem:[%s3296_s5 + $0x18] sm:$0xff]  }
 0x62d   :  { %1389 = vmatpush1.bf16.msra.mxu0 %v2545_v57  ;;  %1430 = vmatpush1.bf16.msra.mxu1 %v2546_v5  ;;  %v2380_v57 = vld [vmem:[%s3296_s5 + $0x10] sm:$0xff]   ;;  %v2381_v5 = vld [vmem:[%s3296_s5 + $0x8] sm:$0xff]  }
 0x62e   :  { %1390 = vmatprep.subr.bf16.mxu0 %v2547_v44  ;;  %1431 = vmatprep.subr.bf16.mxu1 %v2548_v52  ;;  %v2382_v44 = vld [vmem:[%s3296_s5] sm:$0xff]  }
 0x62f   :  { %1412 = vmatprep.mubr.bf16.mxu0 %v3323_v43  ;;  %1453 = vmatprep.mubr.bf16.mxu1 %v3323_v43  ;;  %v2553_v43 = vld [vmem:[%s3319_s0 + $0x20] ss:$16 sps:$4 sm:$0xff]  }
 0x631   :  { %1391 = vmatpush1.bf16.msra.mxu0 %v2549_v26  ;;  %1432 = vmatpush1.bf16.msra.mxu1 %v2550_v11  ;;  %v3326_v11 = vld [vmem:[#allocation4_spill] sm:$0xff] }
 0x632   :  { %1392 = vmatprep.subr.bf16.mxu0 %v2551_v37  ;;  %1433 = vmatprep.subr.bf16.mxu1 %v2552_v48 }
 0x635   :  { %1393 = vmatpush1.bf16.msra.mxu0 %v2553_v43  ;;  %1434 = vmatpush1.bf16.msra.mxu1 %v2789_v33 }
 0x636   :  { %1394 = vmatprep.subr.bf16.mxu0 %v2554_v12  ;;  %1435 = vmatprep.subr.bf16.mxu1 %v2796_v34 }
 0x639   :  { %1395 = vmatpush1.bf16.msra.mxu0 %v2784_v32  ;;  %1436 = vmatpush1.bf16.msra.mxu1 %v2810_v36 }
 0x63a   :  { %2266 = vmatprep.subr.bf16.mxu1 %v3324_v56  ;;  %2254 = vmatprep.subr.bf16.mxu0 %v3324_v56 }
 0x6ec   :  { %v1289_v31 = vpop.f32.mrf.mxu0  ;;  %v1330_v58 = vpop.f32.mrf.mxu1 }
 0x6ed   :  { %v1337_v62 = vadd.f32 %v1289_v31, %v2862_v45  ;;  %v1339_v33 = vadd.f32 %v1330_v58, %v2927_v21 }
 0x6ee   :  { %v1291_v4 = vpop.f32.mrf.mxu0  ;;  %v1332_v50 = vpop.f32.mrf.mxu1 }
 0x6ef   :  { %v2166_v51 = vmul.f32 -1.442695, %v1337_v62  ;;  %v2168_v3 = vmul.f32 -1.442695, %v1339_v33  ;;  %v1338_v34 = vadd.f32 %v1291_v4, %v3325_v6  ;;  %v1340_v23 = vadd.f32 %v1332_v50, %v2932_v47  ;;  %v3327_v62 = vld [vmem:[#allocation5_spill] sm:$0xff] }
 0x6f0   :  { %v1293_v19 = vpop.f32.mrf.mxu0  ;;  %v1334_v32 = vpop.f32.mrf.mxu1 }
 0x6f1   :  { %2505 = vpow2.f32 %v2166_v51  ;;  %v2167_v36 = vmul.f32 -1.442695, %v1338_v34  ;;  %v2169_v25 = vmul.f32 -1.442695, %v1340_v23  ;;  %v2184_v34 = vld [vmem:[%s3298_s8] ss:$0 sm:$0xff] }
 0x6f2   :  { %2507 = vpow2.f32 %v2168_v3  ;;  %v1294_v20 = vpop.f32.mrf.mxu0  ;;  %v1335_v22 = vpop.f32.mrf.mxu1 }
 0x6f3   :  { %2509 = vpow2.f32 %v2167_v36 }
 0x6fe   :  { %v2506_v24 = vpop.eup %2505 }
 0x6ff   :  { %v2508_v45 = vpop.eup %2507  ;;  %v1353_v29 = vadd.f32 1.0, %v2506_v24 }
 0x700   :  { %v2510_v21 = vpop.eup %2509  ;;  %v1355_v27 = vadd.f32 1.0, %v2508_v45 }
 0x701   :  { %v1354_v28 = vadd.f32 1.0, %v2510_v21 }
 0x702   :  { %2511 = vrcp.f32 %v1355_v27 }
 0x703   :  { %2513 = vpow2.f32 %v2169_v25 }
 0x704   :  { %2515 = vrcp.f32 %v1354_v28 }
 0x705   :  { %2517 = vrcp.f32 %v1353_v29 }
 0x70f   :  { %v2512_v30 = vpop.eup %2511 }
 0x710   :  { %v2514_v63 = vpop.eup %2513  ;;  %v1365_v8 = vmul.f32 2.0, %v2512_v30 }
 0x711   :  { %v2516_v15 = vpop.eup %2515  ;;  %v1356_v18 = vadd.f32 1.0, %v2514_v63 }
 0x712   :  { %v2170_v53 = vadd.f32 -1.0, %v1365_v8  ;;  %v2518_v16 = vpop.eup %2517  ;;  %v1367_v47 = vmul.f32 %v2516_v15, %v3079_v0  ;;  %v2375_v0 = vld [vmem:[%s3294_s9 + $0x18] sm:$0xff]  }
 0x713   :  { %2519 = vrcp.f32 %v1356_v18 }
 0x714   :  { %v1368_v39 = vmul.f32 %v2518_v16, %v2170_v53 }
 0x716   :  { %v3127_v42 = vadd.f32 %v1368_v39, %v1367_v47 }
 0x718   :  { %2521 = vtanh.f32 %v3127_v42 }
 0x720   :  { %v2520_v9 = vpop.eup %2519 }
 0x725   :  { %v2522_v55 = vpop.eup %2521 }
 0x726   :  { %v1371_v41 = vmul.f32 %v2522_v55, %v2520_v9 }
 0x728   :  { %v1376_v49 = vpack.c.bf16 %v1371_v41, %v1371_v41 }
 0x72a   :  { %2171 = vmatmul.mubr.msk.bf16.vlgmr.msra.gmra.mxu0 %vm501_vm2, %v1376_v49  ;;  %2172 = vmatmul.mubr.msk.bf16.vlgmr.msra.gmra.mxu1 %vm501_vm2, %v1376_v49  ;;  %v2383_v49 = vld [vmem:[%s3297_s11 + $0x18] sm:$0xff]  }
 0x72b   :  { %2267 = vmatpush3.bf16.msra.mxu1 %v1608_v54  ;;  %2270 = vmatprep.mubr.msk.bf16.mxu1 %vm2558_vm4, %v3324_v56 }
 0x72c   :  { %2268 = vmatprep.subr.bf16.mxu1 %v3324_v56  ;;  %2262 = vmatprep.mubr.msk.bf16.mxu0 %vm2558_vm4, %v3324_v56 }
 0x72d   :  { %2255 = vmatpush3.bf16.msra.mxu0 %v2379_v40 }
 0x72e   :  { %2256 = vmatprep.subr.bf16.mxu0 %v3324_v56 }
 0x72f   :  { %2269 = vmatpush3.bf16.msra.mxu1 %v2370_v61  ;;  %v2384_v61 = vld [vmem:[%s3297_s11 + $0x10] sm:$0xff]  }
 0x730   :  { %2274 = vmatprep.subr.bf16.mxu1 %v3324_v56 }
 0x731   :  { %2257 = vmatpush3.bf16.msra.mxu0 %v2380_v57 }
 0x732   :  { %2271 = vmatmul.mubr.msk.bf16.vlgmr.msra.gmra.mxu1 %vm1602_vm5, %v1585_v35  ;;  %2258 = vmatprep.subr.bf16.mxu0 %v3324_v56  ;;  %v2387_v35 = vld [vmem:[%s3299_s13 + $0x8] sm:$0xff]  }
 0x733   :  { %2275 = vmatpush3.bf16.msra.mxu1 %v2371_v17  ;;  %2290 = vmatprep.mubr.msk.bf16.mxu1 %vm2558_vm4, %v3324_v56  ;;  %v2388_v17 = vld [vmem:[%s3299_s13] sm:$0xff]  }
 0x734   :  { %2276 = vmatprep.subr.bf16.mxu1 %v3324_v56 }
 0x735   :  { %2259 = vmatpush3.bf16.msra.mxu0 %v2381_v5  ;;  %v2390_v5 = vld [vmem:[%s3300_s14 + $0x10] sm:$0xff]  }
 0x736   :  { %2260 = vmatprep.subr.bf16.mxu0 %v3324_v56 }
 0x737   :  { %2277 = vmatpush3.bf16.msra.mxu1 %v2372_v38  ;;  %v2188_v38 = vld [vmem:[%s3301_s10] ss:$0 sm:$0xff] }
 0x738   :  { %2278 = vmatprep.subr.bf16.mxu1 %v3324_v56 }
 0x739   :  { %2261 = vmatpush3.bf16.msra.mxu0 %v2382_v44  ;;  %v2178_v44 = vld [vmem:[%s3302_s6] ss:$0 sm:$0xff] }
 0x73a   :  { %2294 = vmatprep.subr.bf16.mxu0 %v3324_v56 }
 0x73b   :  { %2279 = vmatpush3.bf16.msra.mxu1 %v2373_v59 }
 0x73c   :  { %2280 = vmatprep.subr.bf16.mxu1 %v3324_v56 }
 0x73f   :  { %2281 = vmatpush3.bf16.msra.mxu1 %v2374_v13 }
 0x740   :  { %2282 = vmatprep.subr.bf16.mxu1 %v3324_v56 }
 0x743   :  { %2283 = vmatpush3.bf16.msra.mxu1 %v2375_v0 }
 0x744   :  { %2284 = vmatprep.subr.bf16.mxu1 %v3324_v56 }
 0x747   :  { %2285 = vmatpush3.bf16.msra.mxu1 %v2376_v7 }
 0x748   :  { %2286 = vmatprep.subr.bf16.mxu1 %v3324_v56 }
 0x74b   :  { %2287 = vmatpush3.bf16.msra.mxu1 %v2377_v1 }
 0x74c   :  { %2288 = vmatprep.subr.bf16.mxu1 %v3324_v56 }
 0x74f   :  { %2289 = vmatpush3.bf16.msra.mxu1 %v2378_v14  ;;  %v2389_v14 = vld [vmem:[%s3300_s14 + $0x18] sm:$0xff]  }
 0x750   :  { %2318 = vmatprep.subr.bf16.mxu1 %v3324_v56 }
 0x7ea   :  { %v1414_v52 = vpop.f32.mrf.mxu0  ;;  %v1455_v26 = vpop.f32.mrf.mxu1 }
 0x7eb   :  { %v1462_v37 = vadd.f32 %v1414_v52, %v3326_v11  ;;  %v1464_v48 = vadd.f32 %v1455_v26, %v2934_v2 }
 0x7ec   :  { %v1416_v43 = vpop.f32.mrf.mxu0  ;;  %v1457_v12 = vpop.f32.mrf.mxu1 }
 0x7ed   :  { %v2173_v31 = vmul.f32 -1.442695, %v1462_v37  ;;  %v2175_v58 = vmul.f32 -1.442695, %v1464_v48  ;;  %v1463_v33 = vadd.f32 %v1416_v43, %v3327_v62  ;;  %v1465_v24 = vadd.f32 %v1457_v12, %v2936_v10  ;;  %v2197_v62 = vld [vmem:[%s3304_s12] ss:$0 sm:$0xff] }
 0x7ee   :  { %v1418_v4 = vpop.f32.mrf.mxu0  ;;  %v1459_v50 = vpop.f32.mrf.mxu1 }
 0x7ef   :  { %2523 = vpow2.f32 %v2173_v31  ;;  %v2174_v51 = vmul.f32 -1.442695, %v1463_v33  ;;  %v2176_v21 = vmul.f32 -1.442695, %v1465_v24  ;;  %v2391_v31 = vld [vmem:[%s3300_s14 + $0x8] sm:$0xff]   ;;  %v2396_v24 = vld [vmem:[%s3303_s16] sm:$0xff]  }
 0x7f0   :  { %2525 = vpow2.f32 %v2175_v58  ;;  %v1419_v3 = vpop.f32.mrf.mxu0  ;;  %v1460_v6 = vpop.f32.mrf.mxu1  ;;  %v2392_v58 = vld [vmem:[%s3300_s14] sm:$0xff]  }
 0x7f1   :  { %2527 = vpow2.f32 %v2174_v51  ;;  %v2393_v6 = vld [vmem:[%s3303_s16 + $0x18] sm:$0xff]  }
 0x7f2   :  { %v1644_v19 = vpop.f32.mrf.mxu1 }
 0x7f3   :  { %v1645_v2 = vadd.f32 %v2184_v34, %v1644_v19 }
 0x7f4   :  { %v2272_v32 = vpop.f32.mrf.mxu1 }
 0x7f5   :  { %v1650_v36 = vmax.f32 %v1645_v2, 0.0  ;;  %v2394_v2 = vld [vmem:[%s3303_s16 + $0x10] sm:$0xff]  }
 0x7f6   :  { %v1647_v20 = vpop.f32.mrf.mxu1 }
 0x7f7   :  { %v1667_v22 = vpack.c.bf16 %v1650_v36, %v1650_v36 }
 0x7f8   :  { %v2273_v23 = vpop.f32.mrf.mxu1 }
 0x7f9   :  { %2291 = vmatmul.mubr.bf16.vlgmr.msra.gmra.mxu1 %v1667_v22  ;;  %v2395_v23 = vld [vmem:[%s3303_s16 + $0x8] sm:$0xff]  }
 0x7fa   :  { %2322 = vmatprep.mubr.msk.bf16.mxu1 %vm2558_vm4, %v3324_v56  ;;  %2319 = vmatpush3.bf16.msra.mxu1 %v2387_v35 }
 0x7fb   :  { %2320 = vmatprep.subr.bf16.mxu1 %v3324_v56 }
 0x7fc   :  { %v2524_v45 = vpop.eup %2523 }
 0x7fd   :  { %v2526_v25 = vpop.eup %2525  ;;  %v1478_v30 = vadd.f32 1.0, %v2524_v45 }
 0x7fe   :  { %v2528_v27 = vpop.eup %2527  ;;  %v1480_v28 = vadd.f32 1.0, %v2526_v25  ;;  %2321 = vmatpush3.bf16.msra.mxu1 %v2388_v17  ;;  %v2211_v25 = vld [vmem:[%s3305_s15] ss:$0 sm:$0xff] }
 0x7ff   :  { %v1479_v29 = vadd.f32 1.0, %v2528_v27 }
 0x800   :  { %2529 = vrcp.f32 %v1480_v28 }
 0x801   :  { %2531 = vpow2.f32 %v2176_v21 }
 0x802   :  { %2533 = vrcp.f32 %v1479_v29 }
 0x803   :  { %2535 = vrcp.f32 %v1478_v30 }
 0x80d   :  { %v2530_v63 = vpop.eup %2529 }
 0x80e   :  { %v2532_v8 = vpop.eup %2531  ;;  %v1490_v15 = vmul.f32 2.0, %v2530_v63 }
 0x80f   :  { %v2534_v53 = vpop.eup %2533  ;;  %v1481_v18 = vadd.f32 1.0, %v2532_v8 }
 0x810   :  { %v2177_v10 = vadd.f32 -1.0, %v1490_v15  ;;  %v2536_v16 = vpop.eup %2535  ;;  %v1492_v47 = vmul.f32 %v2534_v53, %v3127_v42  ;;  %v2385_v42 = vld [vmem:[%s3297_s11 + $0x8] sm:$0xff]  }
 0x811   :  { %2537 = vrcp.f32 %v1481_v18 }
 0x812   :  { %v1493_v39 = vmul.f32 %v2536_v16, %v2177_v10 }
 0x814   :  { %v1494_v9 = vadd.f32 %v1493_v39, %v1492_v47 }
 0x816   :  { %2539 = vtanh.f32 %v1494_v9 }
 0x81e   :  { %v2538_v46 = vpop.eup %2537 }
 0x823   :  { %v2540_v55 = vpop.eup %2539 }
 0x824   :  { %v1496_v41 = vmul.f32 %v2540_v55, %v2538_v46 }
 0x826   :  { %v1505_v54 = vpack.c.bf16 %v1496_v41, %v1496_v41 }
 0x828   :  { %2263 = vmatmul.mubr.msk.bf16.vlgmr.msra.gmra.mxu0 %vm501_vm2, %v1505_v54 }
 0x829   :  { %2295 = vmatpush3.bf16.msra.mxu0 %v2383_v49  ;;  %2302 = vmatprep.mubr.msk.bf16.mxu0 %vm2558_vm4, %v3324_v56 }
 0x82a   :  { %2296 = vmatprep.subr.bf16.mxu0 %v3324_v56 }
 0x82d   :  { %2297 = vmatpush3.bf16.msra.mxu0 %v2384_v61 }
 0x82e   :  { %2298 = vmatprep.subr.bf16.mxu0 %v3324_v56 }
 0x831   :  { %2299 = vmatpush3.bf16.msra.mxu0 %v2385_v42 }
 0x832   :  { %2300 = vmatprep.subr.bf16.mxu0 %v3324_v56 }
 0x835   :  { %2301 = vmatpush3.bf16.msra.mxu0 %v2386_v60 }
 0x836   :  { %2306 = vmatprep.subr.bf16.mxu0 %v3324_v56 }
 0x8b9   :  { %v1757_v59 = vpop.f32.mrf.mxu1 }
 0x8ba   :  { %v1758_v13 = vadd.f32 %v2188_v38, %v1757_v59 }
 0x8bb   :  { %v2292_v0 = vpop.f32.mrf.mxu1 }
 0x8bc   :  { %v1763_v7 = vmax.f32 %v1758_v13, 0.0 }
 0x8bd   :  { %v1760_v1 = vpop.f32.mrf.mxu1 }
 0x8be   :  { %v1772_v40 = vpack.c.bf16 %v1763_v7, %v1763_v7 }
 0x8bf   :  { %v2293_v57 = vpop.f32.mrf.mxu1 }
 0x8c0   :  { %2303 = vmatmul.mubr.msk.bf16.vlgmr.msra.gmra.mxu0 %vm501_vm2, %v1772_v40 }
 0x8c1   :  { %2307 = vmatpush3.bf16.msra.mxu0 %v2389_v14  ;;  %2314 = vmatprep.mubr.msk.bf16.mxu0 %vm2558_vm4, %v3324_v56 }
 0x8c2   :  { %2308 = vmatprep.subr.bf16.mxu0 %v3324_v56 }
 0x8c5   :  { %2309 = vmatpush3.bf16.msra.mxu0 %v2390_v5 }
 0x8c6   :  { %2310 = vmatprep.subr.bf16.mxu0 %v3324_v56 }
 0x8c9   :  { %2311 = vmatpush3.bf16.msra.mxu0 %v2391_v31 }
 0x8ca   :  { %2312 = vmatprep.subr.bf16.mxu0 %v3324_v56 }
 0x8cd   :  { %2313 = vmatpush3.bf16.msra.mxu0 %v2392_v58 }
 0x8ce   :  { %2326 = vmatprep.subr.bf16.mxu0 %v3324_v56 }
 0x8e8   :  { %v1574_v52 = vpop.f32.mrf.mxu0 }
 0x8e9   :  { %v1575_v26 = vadd.f32 %v2178_v44, %v1574_v52 }
 0x8ea   :  { %v2264_v11 = vpop.f32.mrf.mxu0 }
 0x8eb   :  { %v1580_v37 = vmax.f32 %v1575_v26, 0.0 }
 0x8ec   :  { %v1577_v48 = vpop.f32.mrf.mxu0 }
 0x8ed   :  { %v1852_v43 = vpack.c.bf16 %v1580_v37, %v1580_v37 }
 0x8ee   :  { %v2265_v12 = vpop.f32.mrf.mxu0 }
 0x8ef   :  { %2323 = vmatmul.mubr.msk.bf16.vlgmr.msra.gmra.mxu1 %vm1941_vm6, %v1852_v43 }
 0x980   :  { %v1841_v33 = vpop.f32.mrf.mxu0 }
 0x981   :  { %v1842_v4 = vadd.f32 %v2197_v62, %v1841_v33 }
 0x982   :  { %v2304_v50 = vpop.f32.mrf.mxu0 }
 0x983   :  { %v1847_v51 = vmax.f32 %v1842_v4, 0.0 }
 0x984   :  { %v1844_v3 = vpop.f32.mrf.mxu0 }
 0x985   :  { %v1861_v34 = vpack.c.bf16 %v1847_v51, %v1847_v51 }
 0x986   :  { %v2305_v19 = vpop.f32.mrf.mxu0 }
 0x987   :  { %2315 = vmatmul.mubr.msk.bf16.vlgmr.msra.gmra.mxu0 %vm501_vm2, %v1861_v34 }
 0x988   :  { %2327 = vmatpush3.bf16.msra.mxu0 %v2393_v6  ;;  %2334 = vmatprep.mubr.msk.bf16.mxu0 %vm2558_vm4, %v3324_v56 }
 0x989   :  { %2328 = vmatprep.subr.bf16.mxu0 %v3324_v56 }
 0x98c   :  { %2329 = vmatpush3.bf16.msra.mxu0 %v2394_v2 }
 0x98d   :  { %2330 = vmatprep.subr.bf16.mxu0 %v3324_v56 }
 0x990   :  { %2331 = vmatpush3.bf16.msra.mxu0 %v2395_v23 }
 0x991   :  { %2332 = vmatprep.subr.bf16.mxu0 %v3324_v56  ;;  %v2212_v56 = vld [vmem:[%s3306_s17] ss:$0 sm:$0xff] }
 0x994   :  { %2333 = vmatpush3.bf16.msra.mxu0 %v2396_v24 }
 0x9af   :  { %v1979_v32 = vpop.f32.mrf.mxu1 }
 0x9b1   :  { %v2324_v36 = vpop.f32.mrf.mxu1 }
 0x9b3   :  { %v1982_v20 = vpop.f32.mrf.mxu1 }
 0x9b5   :  { %v2325_v22 = vpop.f32.mrf.mxu1 }
 0xa47   :  { %v1923_v45 = vpop.f32.mrf.mxu0 }
 0xa48   :  { %v1980_v21 = vadd.f32 %v1979_v32, %v1923_v45 }
 0xa49   :  { %v2316_v27 = vpop.f32.mrf.mxu0 }
 0xa4a   :  { %v1992_v28 = vadd.f32 %v2211_v25, %v1980_v21 }
 0xa4b   :  { %v1926_v29 = vpop.f32.mrf.mxu0 }
 0xa4c   :  { %v1993_v30 = vmax.f32 %v1992_v28, 0.0 }
 0xa4d   :  { %v2317_v63 = vpop.f32.mrf.mxu0 }
 0xa4e   :  { %v2002_v8 = vpack.c.bf16 %v1993_v30, %v1993_v30 }
 0xa50   :  { %2335 = vmatmul.mubr.msk.bf16.vlgmr.msra.gmra.mxu0 %vm501_vm2, %v2002_v8 }
 0xb10   :  { %v2071_v15 = vpop.f32.mrf.mxu0 }
 0xb11   :  { %v2072_v53 = vadd.f32 %v2212_v56, %v2071_v15 }
 0xb12   :  { %v2336_v10 = vpop.f32.mrf.mxu0 }
 0xb13   :  { %v2218_v16 = vmul.f32 -1.442695, %v2072_v53 }
 0xb14   :  { %v2074_v18 = vpop.f32.mrf.mxu0 }
 0xb15   :  { %2541 = vpow2.f32 %v2218_v16 }
 0xb16   :  { %v2337_v39 = vpop.f32.mrf.mxu0 }
 0xb22   :  { %v2542_v47 = vpop.eup %2541 }
 0xb23   :  { %v2080_v9 = vadd.f32 1.0, %v2542_v47 }
 0xb25   :  { %2543 = vrcp.f32 %v2080_v9 }
 0xb32   :  { %v2544_v46 = vpop.eup %2543 }
 0xb33   :  { %2083 = vst [vmem:[%s3307_s18] sm:$0xff] %v2544_v46 }

</bundles_post_ra>
